<compile_context>
chip_gen: v7x
topology: tpu7x:2x2x1
jax: 0.10.0
libtpu: 0.0.40
codegen_flags: <defaults>
</compile_context>

<pallas_src>
import functools
import math

import jax
import jax.numpy as jnp
from jax.experimental import pallas as pl
from jax.experimental.pallas import tpu as pltpu

_BN_EPS = 1e-5


def _encoder_kernel(x_ref, mask_ref, pe_ref, wqkv_ref, bqkv_ref, wout_ref,
                    vecs_ref, fin_ref, o_ref, *, heads):
    # x_ref   : (1, C, T)     one batch element, channel-major (NCW)
    # mask_ref: (1, T, T)     attention mask (1 = keep, 0 = masked)
    # pe_ref  : (C, T)        positional-encoding table slice
    # wqkv_ref: (L, 3C, C)    per layer fused [Wq; Wk; Wv]          (each (Cout, Cin))
    # bqkv_ref: (L, 3C, 1)    per layer fused [bq; bk; bv]
    # wout_ref: (L, 3, C, C)  per layer: Wo, Wff1, Wff2
    # vecs_ref: (L, 7, C, 1)  per layer: bn1_scale, bn1_shift, bo, bn2_scale, bn2_shift, bff1, bff2
    # fin_ref : (2, C, 1)     final BatchNorm scale, shift
    # o_ref   : (1, C, T)
    n_layers = wout_ref.shape[0]
    C, T = pe_ref.shape
    d_k = C // heads
    inv_sqrt_dk = 1.0 / math.sqrt(d_k)
    sqrt_d = math.sqrt(C)

    x = x_ref[0] * sqrt_d + pe_ref[...]          # positional encoding, (C, T) f32
    mask_zero = mask_ref[0] == 0.0               # hoisted: (T, T) bool, reused by all layers/heads

    for l in range(n_layers):
        # ---- BatchNorm1d #1 (eval mode, folded to scale/shift) ----
        x2 = x * vecs_ref[l, 0] + vecs_ref[l, 1]

        # ---- Multi-head self-attention: fused QKV projection (channel-major) ----
        qkv = jnp.dot(wqkv_ref[l], x2, preferred_element_type=jnp.float32) + bqkv_ref[l]
        q = qkv[0:C]                              # (C, T)
        k = qkv[C:2 * C]
        v = qkv[2 * C:3 * C]

        head_outs = []
        for h in range(heads):
            sl = slice(h * d_k, (h + 1) * d_k)
            qh, kh, vh = q[sl], k[sl], v[sl]                              # (d_k, T)
            # scores[tq, tk] = sum_d qh[d, tq] * kh[d, tk] / sqrt(d_k)
            s = jax.lax.dot_general(qh, kh, (((0,), (0,)), ((), ())),
                                    preferred_element_type=jnp.float32) * inv_sqrt_dk
            s = jnp.where(mask_zero, -1.0e9, s)                           # masked_fill
            s = s - jnp.max(s, axis=-1, keepdims=True)
            p = jnp.exp(s)
            p = p * (1.0 / jnp.sum(p, axis=-1, keepdims=True))            # softmax over keys
            # out[d, tq] = sum_tk vh[d, tk] * p[tq, tk]
            head_outs.append(
                jax.lax.dot_general(vh, p, (((1,), (1,)), ((), ())),
                                    preferred_element_type=jnp.float32))
        concat = jnp.concatenate(head_outs, axis=0)                       # (C, T)
        attn = jnp.dot(wout_ref[l, 0], concat,
                       preferred_element_type=jnp.float32) + vecs_ref[l, 2]
        x = x + attn                                                      # residual 1

        # ---- BatchNorm1d #2 ----
        x2 = x * vecs_ref[l, 3] + vecs_ref[l, 4]

        # ---- FeedForward: Conv1d(k=1) -> ReLU -> Conv1d(k=1) ----
        hmid = jnp.maximum(
            jnp.dot(wout_ref[l, 1], x2, preferred_element_type=jnp.float32) + vecs_ref[l, 5],
            0.0)
        ff = jnp.dot(wout_ref[l, 2], hmid,
                     preferred_element_type=jnp.float32) + vecs_ref[l, 6]
        x = x + ff                                                        # residual 2

    # ---- final BatchNorm1d ----
    o_ref[0] = (x * fin_ref[0] + fin_ref[1]).astype(o_ref.dtype)


def _positional_encoding(d_model, seq_len, dtype=jnp.float32):
    # Exact reproduction of _PositionalEncoder's table (note the 2*i / 2*(i+1) exponents).
    r = jnp.arange(d_model, dtype=jnp.float32)
    pos = jnp.arange(seq_len, dtype=jnp.float32)
    ang = pos[None, :] / (10000.0 ** (2.0 * r / d_model))[:, None]        # (C, T)
    pe = jnp.where((jnp.arange(d_model) % 2 == 0)[:, None], jnp.sin(ang), jnp.cos(ang))
    return pe.astype(dtype)


def _fold_bn(gamma, beta, mean, var):
    scale = gamma / jnp.sqrt(var + _BN_EPS)
    shift = beta - mean * scale
    return scale, shift


@functools.partial(jax.jit, static_argnames=("heads",))
def encoder_forward(x, mask, params, *, heads):
    """x: (B, d_model, T) f32 NCW; mask: (B, T, T) {0,1}. Returns (B, d_model, T) f32."""
    B, C, T = x.shape
    L = params["Wq"].shape[0]

    pe = _positional_encoding(C, T)

    # Fused QKV weight / bias (one MXU matmul per layer for all three projections).
    w_qkv = jnp.concatenate([params["Wq"], params["Wk"], params["Wv"]], axis=1)   # (L, 3C, C)
    b_qkv = jnp.concatenate([params["bq"], params["bk"], params["bv"]], axis=1)[..., None]  # (L, 3C, 1)

    w_out = jnp.stack([params["Wo"], params["W1"], params["W2"]], axis=1)         # (L, 3, C, C)

    s1, t1 = _fold_bn(params["bn1_g"], params["bn1_b"], params["bn1_m"], params["bn1_v"])
    s2, t2 = _fold_bn(params["bn2_g"], params["bn2_b"], params["bn2_m"], params["bn2_v"])
    vecs = jnp.stack([s1, t1, params["bo"], s2, t2, params["b1"], params["b2"]],
                     axis=1)[..., None]                                           # (L, 7, C, 1)

    sf, tf = _fold_bn(params["fin_g"], params["fin_b"], params["fin_m"], params["fin_v"])
    fin = jnp.stack([sf, tf], axis=0)[..., None]                                  # (2, C, 1)

    # Advisory cost model: memory-bound (weights tiny & resident, one pass over activations).
    flops = B * L * (12 * C * C * T + 4 * C * T * T)
    cost = pl.CostEstimate(
        flops=int(flops),
        transcendentals=int(B * L * heads * T * T),
        bytes_accessed=int(4 * (2 * B * C * T + B * T * T
                                + w_qkv.size + b_qkv.size + w_out.size
                                + vecs.size + fin.size + pe.size)),
    )

    kernel = functools.partial(_encoder_kernel, heads=heads)
    return pl.pallas_call(
        kernel,
        out_shape=jax.ShapeDtypeStruct((B, C, T), x.dtype),
        grid_spec=pltpu.PrefetchScalarGridSpec(
            num_scalar_prefetch=0,
            grid=(B,),
            in_specs=[
                pl.BlockSpec((1, C, T), lambda b: (b, 0, 0)),             # x (per batch)
                pl.BlockSpec((1, T, T), lambda b: (b, 0, 0)),             # mask (per batch)
                pl.BlockSpec((C, T), lambda b: (0, 0)),                   # pe (resident)
                pl.BlockSpec((L, 3 * C, C), lambda b: (0, 0, 0)),         # fused QKV W (resident)
                pl.BlockSpec((L, 3 * C, 1), lambda b: (0, 0, 0)),         # fused QKV b (resident)
                pl.BlockSpec((L, 3, C, C), lambda b: (0, 0, 0, 0)),       # Wo/W1/W2 (resident)
                pl.BlockSpec((L, 7, C, 1), lambda b: (0, 0, 0, 0)),       # vectors (resident)
                pl.BlockSpec((2, C, 1), lambda b: (0, 0, 0)),             # final BN (resident)
            ],
            out_specs=pl.BlockSpec((1, C, T), lambda b: (b, 0, 0)),
        ),
        compiler_params=pltpu.CompilerParams(
            dimension_semantics=("parallel",),
            vmem_limit_bytes=64 * 1024 * 1024,
        ),
        cost_estimate=cost,
    )(x, mask, pe, w_qkv, b_qkv, w_out, vecs, fin)


# ----------------------------- pure-JAX reference ------------------------------
def _bn_eval(x, g, b, m, v):
    return (x - m[None, :, None]) / jnp.sqrt(v[None, :, None] + _BN_EPS) \
        * g[None, :, None] + b[None, :, None]


def _reference_forward(x, mask, params, heads):
    B, C, T = x.shape
    L = params["Wq"].shape[0]
    d_k = C // heads
    pe = _positional_encoding(C, T)
    x = x * math.sqrt(C) + pe[None]
    for l in range(L):
        x2 = _bn_eval(x, params["bn1_g"][l], params["bn1_b"][l],
                      params["bn1_m"][l], params["bn1_v"][l])
        xt = jnp.transpose(x2, (0, 2, 1))                                 # (B, T, C)
        q = xt @ params["Wq"][l].T + params["bq"][l]
        k = xt @ params["Wk"][l].T + params["bk"][l]
        v = xt @ params["Wv"][l].T + params["bv"][l]

        def split(z):
            return jnp.transpose(z.reshape(B, T, heads, d_k), (0, 2, 1, 3))  # (B,h,T,dk)

        q, k, v = split(q), split(k), split(v)
        s = jnp.einsum("bhqd,bhkd->bhqk", q, k) / math.sqrt(d_k)
        s = jnp.where(mask[:, None] == 0.0, -1.0e9, s)
        p = jax.nn.softmax(s, axis=-1)
        o = jnp.einsum("bhqk,bhkd->bhqd", p, v)
        o = jnp.transpose(o, (0, 2, 1, 3)).reshape(B, T, C)
        attn = jnp.transpose(o @ params["Wo"][l].T + params["bo"][l], (0, 2, 1))
        x = x + attn

        x2 = _bn_eval(x, params["bn2_g"][l], params["bn2_b"][l],
                      params["bn2_m"][l], params["bn2_v"][l])
        h = jnp.maximum(jnp.einsum("oc,bct->bot", params["W1"][l], x2)
                        + params["b1"][l][None, :, None], 0.0)
        ff = jnp.einsum("oc,bct->bot", params["W2"][l], h) + params["b2"][l][None, :, None]
        x = x + ff
    return _bn_eval(x, params["fin_g"], params["fin_b"], params["fin_m"], params["fin_v"])


def _init_params(key, d_model, n_layers):
    keys = jax.random.split(key, 32)
    it = iter(keys)
    L, C = n_layers, d_model
    bound = 1.0 / math.sqrt(C)

    def u(shape, b=bound):
        return jax.random.uniform(next(it), shape, jnp.float32, -b, b)

    params = {
        # Linear / 1x1-Conv weights stored as (Cout, Cin) (PyTorch layout, kernel dim squeezed).
        "Wq": u((L, C, C)), "Wk": u((L, C, C)), "Wv": u((L, C, C)), "Wo": u((L, C, C)),
        "W1": u((L, C, C)), "W2": u((L, C, C)),
        "bq": u((L, C)), "bk": u((L, C)), "bv": u((L, C)), "bo": u((L, C)),
        "b1": u((L, C)), "b2": u((L, C)),
    }

    def bn(prefix, shape):
        params[prefix + "_g"] = 1.0 + 0.1 * jax.random.normal(next(it), shape, jnp.float32)
        params[prefix + "_b"] = 0.1 * jax.random.normal(next(it), shape, jnp.float32)
        params[prefix + "_m"] = jax.random.normal(next(it), shape, jnp.float32)
        params[prefix + "_v"] = jax.random.uniform(next(it), shape, jnp.float32, 20.0, 40.0)

    bn("bn1", (L, C))
    bn("bn2", (L, C))
    bn("fin", (C,))
    return params


if __name__ == "__main__":
    B, d_model, T = 2, 32, 16          # (batch, channels, time) - NCW
    heads, n_layers = 4, 2

    key = jax.random.PRNGKey(0)
    kx, kp = jax.random.split(key)
    x = jax.random.normal(kx, (B, d_model, T), dtype=jnp.float32)
    mask = jnp.broadcast_to(jnp.tril(jnp.ones((T, T), jnp.float32)), (B, T, T))
    params = _init_params(kp, d_model, n_layers)

    out = encoder_forward(x, mask, params, heads=heads)
    out = jax.block_until_ready(out)

    ref = _reference_forward(x, mask, params, heads)
    assert out.shape == (B, d_model, T), out.shape
    err = float(jnp.max(jnp.abs(out - ref)))
    assert err < 1e-2, f"mismatch vs reference: max abs err {err}"
    print("KERNEL_OK")
</pallas_src>

<mosaic_0001>
module attributes {stable_mosaic.version = 11 : i64} {
  func.func @_encoder_kernel(%arg0: i32, %arg1: memref<1x32x16xf32, #tpu.memory_space<vmem>>, %arg2: memref<1x16x16xf32, #tpu.memory_space<vmem>>, %arg3: memref<32x16xf32, #tpu.memory_space<vmem>>, %arg4: memref<2x96x32xf32, #tpu.memory_space<vmem>>, %arg5: memref<2x96x1xf32, #tpu.memory_space<vmem>>, %arg6: memref<2x3x32x32xf32, #tpu.memory_space<vmem>>, %arg7: memref<2x7x32x1xf32, #tpu.memory_space<vmem>>, %arg8: memref<2x32x1xf32, #tpu.memory_space<vmem>>, %arg9: memref<1x32x16xf32, #tpu.memory_space<vmem>>) attributes {dimension_semantics = [#tpu.dimension_semantics<parallel>], iteration_bounds = array<i64: 2>, scalar_prefetch = 0 : i64, scratch_operands = 0 : i64, tpu.core_type = #tpu.core_type<tc>, window_params = [{transform_indices = @transform_0, window_bounds = array<i64: 1, 32, 16>}, {transform_indices = @transform_1, window_bounds = array<i64: 1, 16, 16>}, {pipeline_mode = #tpu.pipeline_mode<synchronous>, transform_indices = @transform_2, window_bounds = array<i64: 32, 16>}, {pipeline_mode = #tpu.pipeline_mode<synchronous>, transform_indices = @transform_3, window_bounds = array<i64: 2, 96, 32>}, {pipeline_mode = #tpu.pipeline_mode<synchronous>, transform_indices = @transform_4, window_bounds = array<i64: 2, 96, 1>}, {pipeline_mode = #tpu.pipeline_mode<synchronous>, transform_indices = @transform_5, window_bounds = array<i64: 2, 3, 32, 32>}, {pipeline_mode = #tpu.pipeline_mode<synchronous>, transform_indices = @transform_6, window_bounds = array<i64: 2, 7, 32, 1>}, {pipeline_mode = #tpu.pipeline_mode<synchronous>, transform_indices = @transform_7, window_bounds = array<i64: 2, 32, 1>}, {transform_indices = @transform_8, window_bounds = array<i64: 1, 32, 16>}]} {
    %c0 = arith.constant 0 : index
    %c0_0 = arith.constant 0 : index
    %c0_1 = arith.constant 0 : index
    %0 = vector.load %arg1[%c0, %c0_0, %c0_1] : memref<1x32x16xf32, #tpu.memory_space<vmem>>, vector<1x32x16xf32>
    %1 = vector.shape_cast %0 : vector<1x32x16xf32> to vector<32x16xf32>
    %cst = arith.constant 5.65685415 : f32
    %2 = vector.broadcast %cst : f32 to vector<32x16xf32>
    %3 = arith.mulf %1, %2 : vector<32x16xf32>
    %c0_2 = arith.constant 0 : index
    %c0_3 = arith.constant 0 : index
    %4 = vector.load %arg3[%c0_2, %c0_3] : memref<32x16xf32, #tpu.memory_space<vmem>>, vector<32x16xf32>
    %5 = arith.addf %3, %4 : vector<32x16xf32>
    %c0_4 = arith.constant 0 : index
    %c0_5 = arith.constant 0 : index
    %c0_6 = arith.constant 0 : index
    %6 = vector.load %arg2[%c0_4, %c0_5, %c0_6] : memref<1x16x16xf32, #tpu.memory_space<vmem>>, vector<1x16x16xf32>
    %7 = vector.shape_cast %6 : vector<1x16x16xf32> to vector<16x16xf32>
    %cst_7 = arith.constant 0.000000e+00 : f32
    %8 = vector.broadcast %cst_7 : f32 to vector<16x16xf32>
    %9 = arith.cmpf oeq, %7, %8 : vector<16x16xf32>
    %c0_8 = arith.constant 0 : index
    %c0_9 = arith.constant 0 : index
    %c0_10 = arith.constant 0 : index
    %c0_11 = arith.constant 0 : index
    %10 = vector.load %arg7[%c0_8, %c0_9, %c0_10, %c0_11] : memref<2x7x32x1xf32, #tpu.memory_space<vmem>>, vector<1x1x32x1xf32>
    %11 = vector.shape_cast %10 : vector<1x1x32x1xf32> to vector<32x1xf32>
    %12 = vector.broadcast %11 : vector<32x1xf32> to vector<32x16xf32>
    %13 = arith.mulf %5, %12 : vector<32x16xf32>
    %c0_12 = arith.constant 0 : index
    %c1 = arith.constant 1 : index
    %c0_13 = arith.constant 0 : index
    %c0_14 = arith.constant 0 : index
    %14 = vector.load %arg7[%c0_12, %c1, %c0_13, %c0_14] : memref<2x7x32x1xf32, #tpu.memory_space<vmem>>, vector<1x1x32x1xf32>
    %15 = vector.shape_cast %14 : vector<1x1x32x1xf32> to vector<32x1xf32>
    %16 = vector.broadcast %15 : vector<32x1xf32> to vector<32x16xf32>
    %17 = arith.addf %13, %16 : vector<32x16xf32>
    %c0_15 = arith.constant 0 : index
    %c0_16 = arith.constant 0 : index
    %c0_17 = arith.constant 0 : index
    %18 = vector.load %arg4[%c0_15, %c0_16, %c0_17] : memref<2x96x32xf32, #tpu.memory_space<vmem>>, vector<1x96x32xf32>
    %19 = vector.shape_cast %18 : vector<1x96x32xf32> to vector<96x32xf32>
    %cst_18 = arith.constant dense<0.000000e+00> : vector<96x16xf32>
    %20 = tpu.matmul %19, %17, %cst_18 {dimension_numbers = #tpu.dot_dimension_numbers<[1], [0], [0], [1], [0, 0, 1, 1], [], []>} : vector<96x32xf32>, vector<32x16xf32>, vector<96x16xf32> -> vector<96x16xf32>
    %c0_19 = arith.constant 0 : index
    %c0_20 = arith.constant 0 : index
    %c0_21 = arith.constant 0 : index
    %21 = vector.load %arg5[%c0_19, %c0_20, %c0_21] : memref<2x96x1xf32, #tpu.memory_space<vmem>>, vector<1x96x1xf32>
    %22 = vector.shape_cast %21 : vector<1x96x1xf32> to vector<96x1xf32>
    %23 = vector.broadcast %22 : vector<96x1xf32> to vector<96x16xf32>
    %24 = arith.addf %20, %23 : vector<96x16xf32>
    %25 = vector.extract_strided_slice %24 {offsets = [0, 0], sizes = [32, 16], strides = [1, 1]} : vector<96x16xf32> to vector<32x16xf32>
    %26 = vector.extract_strided_slice %24 {offsets = [32, 0], sizes = [32, 16], strides = [1, 1]} : vector<96x16xf32> to vector<32x16xf32>
    %27 = vector.extract_strided_slice %24 {offsets = [64, 0], sizes = [32, 16], strides = [1, 1]} : vector<96x16xf32> to vector<32x16xf32>
    %28 = vector.extract_strided_slice %25 {offsets = [0, 0], sizes = [8, 16], strides = [1, 1]} : vector<32x16xf32> to vector<8x16xf32>
    %29 = vector.extract_strided_slice %26 {offsets = [0, 0], sizes = [8, 16], strides = [1, 1]} : vector<32x16xf32> to vector<8x16xf32>
    %30 = vector.extract_strided_slice %27 {offsets = [0, 0], sizes = [8, 16], strides = [1, 1]} : vector<32x16xf32> to vector<8x16xf32>
    %cst_22 = arith.constant dense<0.000000e+00> : vector<16x16xf32>
    %31 = tpu.matmul %28, %29, %cst_22 {dimension_numbers = #tpu.dot_dimension_numbers<[0], [0], [1], [1], [0, 1, 1, 1], [], []>} : vector<8x16xf32>, vector<8x16xf32>, vector<16x16xf32> -> vector<16x16xf32>
    %cst_23 = arith.constant 0.353553385 : f32
    %32 = vector.broadcast %cst_23 : f32 to vector<16x16xf32>
    %33 = arith.mulf %31, %32 : vector<16x16xf32>
    %cst_24 = arith.constant -1.000000e+09 : f32
    %34 = vector.broadcast %cst_24 : f32 to vector<16x16xf32>
    %35 = arith.select %9, %34, %33 : vector<16x16xi1>, vector<16x16xf32>
    %cst_25 = arith.constant dense<0xFF800000> : vector<16xf32>
    %36 = vector.multi_reduction <maximumf>, %35, %cst_25 [1] : vector<16x16xf32> to vector<16xf32>
    %37 = vector.shape_cast %36 : vector<16xf32> to vector<16x1xf32>
    %38 = vector.broadcast %37 : vector<16x1xf32> to vector<16x16xf32>
    %39 = arith.subf %35, %38 : vector<16x16xf32>
    %40 = math.exp %39 : vector<16x16xf32>
    %cst_26 = arith.constant dense<0.000000e+00> : vector<16xf32>
    %41 = vector.multi_reduction <add>, %40, %cst_26 [1] : vector<16x16xf32> to vector<16xf32>
    %42 = vector.shape_cast %41 : vector<16xf32> to vector<16x1xf32>
    %cst_27 = arith.constant 1.000000e+00 : f32
    %43 = vector.broadcast %cst_27 : f32 to vector<16x1xf32>
    %44 = arith.divf %43, %42 : vector<16x1xf32>
    %45 = vector.broadcast %44 : vector<16x1xf32> to vector<16x16xf32>
    %46 = arith.mulf %40, %45 : vector<16x16xf32>
    %cst_28 = arith.constant dense<0.000000e+00> : vector<8x16xf32>
    %47 = tpu.matmul %30, %46, %cst_28 {dimension_numbers = #tpu.dot_dimension_numbers<[1], [1], [0], [0], [0, 0, 1, 0], [], []>} : vector<8x16xf32>, vector<16x16xf32>, vector<8x16xf32> -> vector<8x16xf32>
    %48 = vector.extract_strided_slice %25 {offsets = [8, 0], sizes = [8, 16], strides = [1, 1]} : vector<32x16xf32> to vector<8x16xf32>
    %49 = vector.extract_strided_slice %26 {offsets = [8, 0], sizes = [8, 16], strides = [1, 1]} : vector<32x16xf32> to vector<8x16xf32>
    %50 = vector.extract_strided_slice %27 {offsets = [8, 0], sizes = [8, 16], strides = [1, 1]} : vector<32x16xf32> to vector<8x16xf32>
    %cst_29 = arith.constant dense<0.000000e+00> : vector<16x16xf32>
    %51 = tpu.matmul %48, %49, %cst_29 {dimension_numbers = #tpu.dot_dimension_numbers<[0], [0], [1], [1], [0, 1, 1, 1], [], []>} : vector<8x16xf32>, vector<8x16xf32>, vector<16x16xf32> -> vector<16x16xf32>
    %cst_30 = arith.constant 0.353553385 : f32
    %52 = vector.broadcast %cst_30 : f32 to vector<16x16xf32>
    %53 = arith.mulf %51, %52 : vector<16x16xf32>
    %cst_31 = arith.constant -1.000000e+09 : f32
    %54 = vector.broadcast %cst_31 : f32 to vector<16x16xf32>
    %55 = arith.select %9, %54, %53 : vector<16x16xi1>, vector<16x16xf32>
    %cst_32 = arith.constant dense<0xFF800000> : vector<16xf32>
    %56 = vector.multi_reduction <maximumf>, %55, %cst_32 [1] : vector<16x16xf32> to vector<16xf32>
    %57 = vector.shape_cast %56 : vector<16xf32> to vector<16x1xf32>
    %58 = vector.broadcast %57 : vector<16x1xf32> to vector<16x16xf32>
    %59 = arith.subf %55, %58 : vector<16x16xf32>
    %60 = math.exp %59 : vector<16x16xf32>
    %cst_33 = arith.constant dense<0.000000e+00> : vector<16xf32>
    %61 = vector.multi_reduction <add>, %60, %cst_33 [1] : vector<16x16xf32> to vector<16xf32>
    %62 = vector.shape_cast %61 : vector<16xf32> to vector<16x1xf32>
    %cst_34 = arith.constant 1.000000e+00 : f32
    %63 = vector.broadcast %cst_34 : f32 to vector<16x1xf32>
    %64 = arith.divf %63, %62 : vector<16x1xf32>
    %65 = vector.broadcast %64 : vector<16x1xf32> to vector<16x16xf32>
    %66 = arith.mulf %60, %65 : vector<16x16xf32>
    %cst_35 = arith.constant dense<0.000000e+00> : vector<8x16xf32>
    %67 = tpu.matmul %50, %66, %cst_35 {dimension_numbers = #tpu.dot_dimension_numbers<[1], [1], [0], [0], [0, 0, 1, 0], [], []>} : vector<8x16xf32>, vector<16x16xf32>, vector<8x16xf32> -> vector<8x16xf32>
    %68 = vector.extract_strided_slice %25 {offsets = [16, 0], sizes = [8, 16], strides = [1, 1]} : vector<32x16xf32> to vector<8x16xf32>
    %69 = vector.extract_strided_slice %26 {offsets = [16, 0], sizes = [8, 16], strides = [1, 1]} : vector<32x16xf32> to vector<8x16xf32>
    %70 = vector.extract_strided_slice %27 {offsets = [16, 0], sizes = [8, 16], strides = [1, 1]} : vector<32x16xf32> to vector<8x16xf32>
    %cst_36 = arith.constant dense<0.000000e+00> : vector<16x16xf32>
    %71 = tpu.matmul %68, %69, %cst_36 {dimension_numbers = #tpu.dot_dimension_numbers<[0], [0], [1], [1], [0, 1, 1, 1], [], []>} : vector<8x16xf32>, vector<8x16xf32>, vector<16x16xf32> -> vector<16x16xf32>
    %cst_37 = arith.constant 0.353553385 : f32
    %72 = vector.broadcast %cst_37 : f32 to vector<16x16xf32>
    %73 = arith.mulf %71, %72 : vector<16x16xf32>
    %cst_38 = arith.constant -1.000000e+09 : f32
    %74 = vector.broadcast %cst_38 : f32 to vector<16x16xf32>
    %75 = arith.select %9, %74, %73 : vector<16x16xi1>, vector<16x16xf32>
    %cst_39 = arith.constant dense<0xFF800000> : vector<16xf32>
    %76 = vector.multi_reduction <maximumf>, %75, %cst_39 [1] : vector<16x16xf32> to vector<16xf32>
    %77 = vector.shape_cast %76 : vector<16xf32> to vector<16x1xf32>
    %78 = vector.broadcast %77 : vector<16x1xf32> to vector<16x16xf32>
    %79 = arith.subf %75, %78 : vector<16x16xf32>
    %80 = math.exp %79 : vector<16x16xf32>
    %cst_40 = arith.constant dense<0.000000e+00> : vector<16xf32>
    %81 = vector.multi_reduction <add>, %80, %cst_40 [1] : vector<16x16xf32> to vector<16xf32>
    %82 = vector.shape_cast %81 : vector<16xf32> to vector<16x1xf32>
    %cst_41 = arith.constant 1.000000e+00 : f32
    %83 = vector.broadcast %cst_41 : f32 to vector<16x1xf32>
    %84 = arith.divf %83, %82 : vector<16x1xf32>
    %85 = vector.broadcast %84 : vector<16x1xf32> to vector<16x16xf32>
    %86 = arith.mulf %80, %85 : vector<16x16xf32>
    %cst_42 = arith.constant dense<0.000000e+00> : vector<8x16xf32>
    %87 = tpu.matmul %70, %86, %cst_42 {dimension_numbers = #tpu.dot_dimension_numbers<[1], [1], [0], [0], [0, 0, 1, 0], [], []>} : vector<8x16xf32>, vector<16x16xf32>, vector<8x16xf32> -> vector<8x16xf32>
    %88 = vector.extract_strided_slice %25 {offsets = [24, 0], sizes = [8, 16], strides = [1, 1]} : vector<32x16xf32> to vector<8x16xf32>
    %89 = vector.extract_strided_slice %26 {offsets = [24, 0], sizes = [8, 16], strides = [1, 1]} : vector<32x16xf32> to vector<8x16xf32>
    %90 = vector.extract_strided_slice %27 {offsets = [24, 0], sizes = [8, 16], strides = [1, 1]} : vector<32x16xf32> to vector<8x16xf32>
    %cst_43 = arith.constant dense<0.000000e+00> : vector<16x16xf32>
    %91 = tpu.matmul %88, %89, %cst_43 {dimension_numbers = #tpu.dot_dimension_numbers<[0], [0], [1], [1], [0, 1, 1, 1], [], []>} : vector<8x16xf32>, vector<8x16xf32>, vector<16x16xf32> -> vector<16x16xf32>
    %cst_44 = arith.constant 0.353553385 : f32
    %92 = vector.broadcast %cst_44 : f32 to vector<16x16xf32>
    %93 = arith.mulf %91, %92 : vector<16x16xf32>
    %cst_45 = arith.constant -1.000000e+09 : f32
    %94 = vector.broadcast %cst_45 : f32 to vector<16x16xf32>
    %95 = arith.select %9, %94, %93 : vector<16x16xi1>, vector<16x16xf32>
    %cst_46 = arith.constant dense<0xFF800000> : vector<16xf32>
    %96 = vector.multi_reduction <maximumf>, %95, %cst_46 [1] : vector<16x16xf32> to vector<16xf32>
    %97 = vector.shape_cast %96 : vector<16xf32> to vector<16x1xf32>
    %98 = vector.broadcast %97 : vector<16x1xf32> to vector<16x16xf32>
    %99 = arith.subf %95, %98 : vector<16x16xf32>
    %100 = math.exp %99 : vector<16x16xf32>
    %cst_47 = arith.constant dense<0.000000e+00> : vector<16xf32>
    %101 = vector.multi_reduction <add>, %100, %cst_47 [1] : vector<16x16xf32> to vector<16xf32>
    %102 = vector.shape_cast %101 : vector<16xf32> to vector<16x1xf32>
    %cst_48 = arith.constant 1.000000e+00 : f32
    %103 = vector.broadcast %cst_48 : f32 to vector<16x1xf32>
    %104 = arith.divf %103, %102 : vector<16x1xf32>
    %105 = vector.broadcast %104 : vector<16x1xf32> to vector<16x16xf32>
    %106 = arith.mulf %100, %105 : vector<16x16xf32>
    %cst_49 = arith.constant dense<0.000000e+00> : vector<8x16xf32>
    %107 = tpu.matmul %90, %106, %cst_49 {dimension_numbers = #tpu.dot_dimension_numbers<[1], [1], [0], [0], [0, 0, 1, 0], [], []>} : vector<8x16xf32>, vector<16x16xf32>, vector<8x16xf32> -> vector<8x16xf32>
    %108 = tpu.concatenate %47, %67, %87, %107 in 0 : vector<8x16xf32>, vector<8x16xf32>, vector<8x16xf32>, vector<8x16xf32> -> vector<32x16xf32>
    %c0_50 = arith.constant 0 : index
    %c0_51 = arith.constant 0 : index
    %c0_52 = arith.constant 0 : index
    %c0_53 = arith.constant 0 : index
    %109 = vector.load %arg6[%c0_50, %c0_51, %c0_52, %c0_53] : memref<2x3x32x32xf32, #tpu.memory_space<vmem>>, vector<1x1x32x32xf32>
    %110 = vector.shape_cast %109 : vector<1x1x32x32xf32> to vector<32x32xf32>
    %cst_54 = arith.constant dense<0.000000e+00> : vector<32x16xf32>
    %111 = tpu.matmul %110, %108, %cst_54 {dimension_numbers = #tpu.dot_dimension_numbers<[1], [0], [0], [1], [0, 0, 1, 1], [], []>} : vector<32x32xf32>, vector<32x16xf32>, vector<32x16xf32> -> vector<32x16xf32>
    %c0_55 = arith.constant 0 : index
    %c2 = arith.constant 2 : index
    %c0_56 = arith.constant 0 : index
    %c0_57 = arith.constant 0 : index
    %112 = vector.load %arg7[%c0_55, %c2, %c0_56, %c0_57] : memref<2x7x32x1xf32, #tpu.memory_space<vmem>>, vector<1x1x32x1xf32>
    %113 = vector.shape_cast %112 : vector<1x1x32x1xf32> to vector<32x1xf32>
    %114 = vector.broadcast %113 : vector<32x1xf32> to vector<32x16xf32>
    %115 = arith.addf %111, %114 : vector<32x16xf32>
    %116 = arith.addf %5, %115 : vector<32x16xf32>
    %c0_58 = arith.constant 0 : index
    %c3 = arith.constant 3 : index
    %c0_59 = arith.constant 0 : index
    %c0_60 = arith.constant 0 : index
    %117 = vector.load %arg7[%c0_58, %c3, %c0_59, %c0_60] : memref<2x7x32x1xf32, #tpu.memory_space<vmem>>, vector<1x1x32x1xf32>
    %118 = vector.shape_cast %117 : vector<1x1x32x1xf32> to vector<32x1xf32>
    %119 = vector.broadcast %118 : vector<32x1xf32> to vector<32x16xf32>
    %120 = arith.mulf %116, %119 : vector<32x16xf32>
    %c0_61 = arith.constant 0 : index
    %c4 = arith.constant 4 : index
    %c0_62 = arith.constant 0 : index
    %c0_63 = arith.constant 0 : index
    %121 = vector.load %arg7[%c0_61, %c4, %c0_62, %c0_63] : memref<2x7x32x1xf32, #tpu.memory_space<vmem>>, vector<1x1x32x1xf32>
    %122 = vector.shape_cast %121 : vector<1x1x32x1xf32> to vector<32x1xf32>
    %123 = vector.broadcast %122 : vector<32x1xf32> to vector<32x16xf32>
    %124 = arith.addf %120, %123 : vector<32x16xf32>
    %c0_64 = arith.constant 0 : index
    %c1_65 = arith.constant 1 : index
    %c0_66 = arith.constant 0 : index
    %c0_67 = arith.constant 0 : index
    %125 = vector.load %arg6[%c0_64, %c1_65, %c0_66, %c0_67] : memref<2x3x32x32xf32, #tpu.memory_space<vmem>>, vector<1x1x32x32xf32>
    %126 = vector.shape_cast %125 : vector<1x1x32x32xf32> to vector<32x32xf32>
    %cst_68 = arith.constant dense<0.000000e+00> : vector<32x16xf32>
    %127 = tpu.matmul %126, %124, %cst_68 {dimension_numbers = #tpu.dot_dimension_numbers<[1], [0], [0], [1], [0, 0, 1, 1], [], []>} : vector<32x32xf32>, vector<32x16xf32>, vector<32x16xf32> -> vector<32x16xf32>
    %c0_69 = arith.constant 0 : index
    %c5 = arith.constant 5 : index
    %c0_70 = arith.constant 0 : index
    %c0_71 = arith.constant 0 : index
    %128 = vector.load %arg7[%c0_69, %c5, %c0_70, %c0_71] : memref<2x7x32x1xf32, #tpu.memory_space<vmem>>, vector<1x1x32x1xf32>
    %129 = vector.shape_cast %128 : vector<1x1x32x1xf32> to vector<32x1xf32>
    %130 = vector.broadcast %129 : vector<32x1xf32> to vector<32x16xf32>
    %131 = arith.addf %127, %130 : vector<32x16xf32>
    %cst_72 = arith.constant 0.000000e+00 : f32
    %132 = vector.broadcast %cst_72 : f32 to vector<32x16xf32>
    %133 = arith.maximumf %131, %132 : vector<32x16xf32>
    %c0_73 = arith.constant 0 : index
    %c2_74 = arith.constant 2 : index
    %c0_75 = arith.constant 0 : index
    %c0_76 = arith.constant 0 : index
    %134 = vector.load %arg6[%c0_73, %c2_74, %c0_75, %c0_76] : memref<2x3x32x32xf32, #tpu.memory_space<vmem>>, vector<1x1x32x32xf32>
    %135 = vector.shape_cast %134 : vector<1x1x32x32xf32> to vector<32x32xf32>
    %cst_77 = arith.constant dense<0.000000e+00> : vector<32x16xf32>
    %136 = tpu.matmul %135, %133, %cst_77 {dimension_numbers = #tpu.dot_dimension_numbers<[1], [0], [0], [1], [0, 0, 1, 1], [], []>} : vector<32x32xf32>, vector<32x16xf32>, vector<32x16xf32> -> vector<32x16xf32>
    %c0_78 = arith.constant 0 : index
    %c6 = arith.constant 6 : index
    %c0_79 = arith.constant 0 : index
    %c0_80 = arith.constant 0 : index
    %137 = vector.load %arg7[%c0_78, %c6, %c0_79, %c0_80] : memref<2x7x32x1xf32, #tpu.memory_space<vmem>>, vector<1x1x32x1xf32>
    %138 = vector.shape_cast %137 : vector<1x1x32x1xf32> to vector<32x1xf32>
    %139 = vector.broadcast %138 : vector<32x1xf32> to vector<32x16xf32>
    %140 = arith.addf %136, %139 : vector<32x16xf32>
    %141 = arith.addf %116, %140 : vector<32x16xf32>
    %c1_81 = arith.constant 1 : index
    %c0_82 = arith.constant 0 : index
    %c0_83 = arith.constant 0 : index
    %c0_84 = arith.constant 0 : index
    %142 = vector.load %arg7[%c1_81, %c0_82, %c0_83, %c0_84] : memref<2x7x32x1xf32, #tpu.memory_space<vmem>>, vector<1x1x32x1xf32>
    %143 = vector.shape_cast %142 : vector<1x1x32x1xf32> to vector<32x1xf32>
    %144 = vector.broadcast %143 : vector<32x1xf32> to vector<32x16xf32>
    %145 = arith.mulf %141, %144 : vector<32x16xf32>
    %c1_85 = arith.constant 1 : index
    %c1_86 = arith.constant 1 : index
    %c0_87 = arith.constant 0 : index
    %c0_88 = arith.constant 0 : index
    %146 = vector.load %arg7[%c1_85, %c1_86, %c0_87, %c0_88] : memref<2x7x32x1xf32, #tpu.memory_space<vmem>>, vector<1x1x32x1xf32>
    %147 = vector.shape_cast %146 : vector<1x1x32x1xf32> to vector<32x1xf32>
    %148 = vector.broadcast %147 : vector<32x1xf32> to vector<32x16xf32>
    %149 = arith.addf %145, %148 : vector<32x16xf32>
    %c1_89 = arith.constant 1 : index
    %c0_90 = arith.constant 0 : index
    %c0_91 = arith.constant 0 : index
    %150 = vector.load %arg4[%c1_89, %c0_90, %c0_91] : memref<2x96x32xf32, #tpu.memory_space<vmem>>, vector<1x96x32xf32>
    %151 = vector.shape_cast %150 : vector<1x96x32xf32> to vector<96x32xf32>
    %cst_92 = arith.constant dense<0.000000e+00> : vector<96x16xf32>
    %152 = tpu.matmul %151, %149, %cst_92 {dimension_numbers = #tpu.dot_dimension_numbers<[1], [0], [0], [1], [0, 0, 1, 1], [], []>} : vector<96x32xf32>, vector<32x16xf32>, vector<96x16xf32> -> vector<96x16xf32>
    %c1_93 = arith.constant 1 : index
    %c0_94 = arith.constant 0 : index
    %c0_95 = arith.constant 0 : index
    %153 = vector.load %arg5[%c1_93, %c0_94, %c0_95] : memref<2x96x1xf32, #tpu.memory_space<vmem>>, vector<1x96x1xf32>
    %154 = vector.shape_cast %153 : vector<1x96x1xf32> to vector<96x1xf32>
    %155 = vector.broadcast %154 : vector<96x1xf32> to vector<96x16xf32>
    %156 = arith.addf %152, %155 : vector<96x16xf32>
    %157 = vector.extract_strided_slice %156 {offsets = [0, 0], sizes = [32, 16], strides = [1, 1]} : vector<96x16xf32> to vector<32x16xf32>
    %158 = vector.extract_strided_slice %156 {offsets = [32, 0], sizes = [32, 16], strides = [1, 1]} : vector<96x16xf32> to vector<32x16xf32>
    %159 = vector.extract_strided_slice %156 {offsets = [64, 0], sizes = [32, 16], strides = [1, 1]} : vector<96x16xf32> to vector<32x16xf32>
    %160 = vector.extract_strided_slice %157 {offsets = [0, 0], sizes = [8, 16], strides = [1, 1]} : vector<32x16xf32> to vector<8x16xf32>
    %161 = vector.extract_strided_slice %158 {offsets = [0, 0], sizes = [8, 16], strides = [1, 1]} : vector<32x16xf32> to vector<8x16xf32>
    %162 = vector.extract_strided_slice %159 {offsets = [0, 0], sizes = [8, 16], strides = [1, 1]} : vector<32x16xf32> to vector<8x16xf32>
    %cst_96 = arith.constant dense<0.000000e+00> : vector<16x16xf32>
    %163 = tpu.matmul %160, %161, %cst_96 {dimension_numbers = #tpu.dot_dimension_numbers<[0], [0], [1], [1], [0, 1, 1, 1], [], []>} : vector<8x16xf32>, vector<8x16xf32>, vector<16x16xf32> -> vector<16x16xf32>
    %cst_97 = arith.constant 0.353553385 : f32
    %164 = vector.broadcast %cst_97 : f32 to vector<16x16xf32>
    %165 = arith.mulf %163, %164 : vector<16x16xf32>
    %cst_98 = arith.constant -1.000000e+09 : f32
    %166 = vector.broadcast %cst_98 : f32 to vector<16x16xf32>
    %167 = arith.select %9, %166, %165 : vector<16x16xi1>, vector<16x16xf32>
    %cst_99 = arith.constant dense<0xFF800000> : vector<16xf32>
    %168 = vector.multi_reduction <maximumf>, %167, %cst_99 [1] : vector<16x16xf32> to vector<16xf32>
    %169 = vector.shape_cast %168 : vector<16xf32> to vector<16x1xf32>
    %170 = vector.broadcast %169 : vector<16x1xf32> to vector<16x16xf32>
    %171 = arith.subf %167, %170 : vector<16x16xf32>
    %172 = math.exp %171 : vector<16x16xf32>
    %cst_100 = arith.constant dense<0.000000e+00> : vector<16xf32>
    %173 = vector.multi_reduction <add>, %172, %cst_100 [1] : vector<16x16xf32> to vector<16xf32>
    %174 = vector.shape_cast %173 : vector<16xf32> to vector<16x1xf32>
    %cst_101 = arith.constant 1.000000e+00 : f32
    %175 = vector.broadcast %cst_101 : f32 to vector<16x1xf32>
    %176 = arith.divf %175, %174 : vector<16x1xf32>
    %177 = vector.broadcast %176 : vector<16x1xf32> to vector<16x16xf32>
    %178 = arith.mulf %172, %177 : vector<16x16xf32>
    %cst_102 = arith.constant dense<0.000000e+00> : vector<8x16xf32>
    %179 = tpu.matmul %162, %178, %cst_102 {dimension_numbers = #tpu.dot_dimension_numbers<[1], [1], [0], [0], [0, 0, 1, 0], [], []>} : vector<8x16xf32>, vector<16x16xf32>, vector<8x16xf32> -> vector<8x16xf32>
    %180 = vector.extract_strided_slice %157 {offsets = [8, 0], sizes = [8, 16], strides = [1, 1]} : vector<32x16xf32> to vector<8x16xf32>
    %181 = vector.extract_strided_slice %158 {offsets = [8, 0], sizes = [8, 16], strides = [1, 1]} : vector<32x16xf32> to vector<8x16xf32>
    %182 = vector.extract_strided_slice %159 {offsets = [8, 0], sizes = [8, 16], strides = [1, 1]} : vector<32x16xf32> to vector<8x16xf32>
    %cst_103 = arith.constant dense<0.000000e+00> : vector<16x16xf32>
    %183 = tpu.matmul %180, %181, %cst_103 {dimension_numbers = #tpu.dot_dimension_numbers<[0], [0], [1], [1], [0, 1, 1, 1], [], []>} : vector<8x16xf32>, vector<8x16xf32>, vector<16x16xf32> -> vector<16x16xf32>
    %cst_104 = arith.constant 0.353553385 : f32
    %184 = vector.broadcast %cst_104 : f32 to vector<16x16xf32>
    %185 = arith.mulf %183, %184 : vector<16x16xf32>
    %cst_105 = arith.constant -1.000000e+09 : f32
    %186 = vector.broadcast %cst_105 : f32 to vector<16x16xf32>
    %187 = arith.select %9, %186, %185 : vector<16x16xi1>, vector<16x16xf32>
    %cst_106 = arith.constant dense<0xFF800000> : vector<16xf32>
    %188 = vector.multi_reduction <maximumf>, %187, %cst_106 [1] : vector<16x16xf32> to vector<16xf32>
    %189 = vector.shape_cast %188 : vector<16xf32> to vector<16x1xf32>
    %190 = vector.broadcast %189 : vector<16x1xf32> to vector<16x16xf32>
    %191 = arith.subf %187, %190 : vector<16x16xf32>
    %192 = math.exp %191 : vector<16x16xf32>
    %cst_107 = arith.constant dense<0.000000e+00> : vector<16xf32>
    %193 = vector.multi_reduction <add>, %192, %cst_107 [1] : vector<16x16xf32> to vector<16xf32>
    %194 = vector.shape_cast %193 : vector<16xf32> to vector<16x1xf32>
    %cst_108 = arith.constant 1.000000e+00 : f32
    %195 = vector.broadcast %cst_108 : f32 to vector<16x1xf32>
    %196 = arith.divf %195, %194 : vector<16x1xf32>
    %197 = vector.broadcast %196 : vector<16x1xf32> to vector<16x16xf32>
    %198 = arith.mulf %192, %197 : vector<16x16xf32>
    %cst_109 = arith.constant dense<0.000000e+00> : vector<8x16xf32>
    %199 = tpu.matmul %182, %198, %cst_109 {dimension_numbers = #tpu.dot_dimension_numbers<[1], [1], [0], [0], [0, 0, 1, 0], [], []>} : vector<8x16xf32>, vector<16x16xf32>, vector<8x16xf32> -> vector<8x16xf32>
    %200 = vector.extract_strided_slice %157 {offsets = [16, 0], sizes = [8, 16], strides = [1, 1]} : vector<32x16xf32> to vector<8x16xf32>
    %201 = vector.extract_strided_slice %158 {offsets = [16, 0], sizes = [8, 16], strides = [1, 1]} : vector<32x16xf32> to vector<8x16xf32>
    %202 = vector.extract_strided_slice %159 {offsets = [16, 0], sizes = [8, 16], strides = [1, 1]} : vector<32x16xf32> to vector<8x16xf32>
    %cst_110 = arith.constant dense<0.000000e+00> : vector<16x16xf32>
    %203 = tpu.matmul %200, %201, %cst_110 {dimension_numbers = #tpu.dot_dimension_numbers<[0], [0], [1], [1], [0, 1, 1, 1], [], []>} : vector<8x16xf32>, vector<8x16xf32>, vector<16x16xf32> -> vector<16x16xf32>
    %cst_111 = arith.constant 0.353553385 : f32
    %204 = vector.broadcast %cst_111 : f32 to vector<16x16xf32>
    %205 = arith.mulf %203, %204 : vector<16x16xf32>
    %cst_112 = arith.constant -1.000000e+09 : f32
    %206 = vector.broadcast %cst_112 : f32 to vector<16x16xf32>
    %207 = arith.select %9, %206, %205 : vector<16x16xi1>, vector<16x16xf32>
    %cst_113 = arith.constant dense<0xFF800000> : vector<16xf32>
    %208 = vector.multi_reduction <maximumf>, %207, %cst_113 [1] : vector<16x16xf32> to vector<16xf32>
    %209 = vector.shape_cast %208 : vector<16xf32> to vector<16x1xf32>
    %210 = vector.broadcast %209 : vector<16x1xf32> to vector<16x16xf32>
    %211 = arith.subf %207, %210 : vector<16x16xf32>
    %212 = math.exp %211 : vector<16x16xf32>
    %cst_114 = arith.constant dense<0.000000e+00> : vector<16xf32>
    %213 = vector.multi_reduction <add>, %212, %cst_114 [1] : vector<16x16xf32> to vector<16xf32>
    %214 = vector.shape_cast %213 : vector<16xf32> to vector<16x1xf32>
    %cst_115 = arith.constant 1.000000e+00 : f32
    %215 = vector.broadcast %cst_115 : f32 to vector<16x1xf32>
    %216 = arith.divf %215, %214 : vector<16x1xf32>
    %217 = vector.broadcast %216 : vector<16x1xf32> to vector<16x16xf32>
    %218 = arith.mulf %212, %217 : vector<16x16xf32>
    %cst_116 = arith.constant dense<0.000000e+00> : vector<8x16xf32>
    %219 = tpu.matmul %202, %218, %cst_116 {dimension_numbers = #tpu.dot_dimension_numbers<[1], [1], [0], [0], [0, 0, 1, 0], [], []>} : vector<8x16xf32>, vector<16x16xf32>, vector<8x16xf32> -> vector<8x16xf32>
    %220 = vector.extract_strided_slice %157 {offsets = [24, 0], sizes = [8, 16], strides = [1, 1]} : vector<32x16xf32> to vector<8x16xf32>
    %221 = vector.extract_strided_slice %158 {offsets = [24, 0], sizes = [8, 16], strides = [1, 1]} : vector<32x16xf32> to vector<8x16xf32>
    %222 = vector.extract_strided_slice %159 {offsets = [24, 0], sizes = [8, 16], strides = [1, 1]} : vector<32x16xf32> to vector<8x16xf32>
    %cst_117 = arith.constant dense<0.000000e+00> : vector<16x16xf32>
    %223 = tpu.matmul %220, %221, %cst_117 {dimension_numbers = #tpu.dot_dimension_numbers<[0], [0], [1], [1], [0, 1, 1, 1], [], []>} : vector<8x16xf32>, vector<8x16xf32>, vector<16x16xf32> -> vector<16x16xf32>
    %cst_118 = arith.constant 0.353553385 : f32
    %224 = vector.broadcast %cst_118 : f32 to vector<16x16xf32>
    %225 = arith.mulf %223, %224 : vector<16x16xf32>
    %cst_119 = arith.constant -1.000000e+09 : f32
    %226 = vector.broadcast %cst_119 : f32 to vector<16x16xf32>
    %227 = arith.select %9, %226, %225 : vector<16x16xi1>, vector<16x16xf32>
    %cst_120 = arith.constant dense<0xFF800000> : vector<16xf32>
    %228 = vector.multi_reduction <maximumf>, %227, %cst_120 [1] : vector<16x16xf32> to vector<16xf32>
    %229 = vector.shape_cast %228 : vector<16xf32> to vector<16x1xf32>
    %230 = vector.broadcast %229 : vector<16x1xf32> to vector<16x16xf32>
    %231 = arith.subf %227, %230 : vector<16x16xf32>
    %232 = math.exp %231 : vector<16x16xf32>
    %cst_121 = arith.constant dense<0.000000e+00> : vector<16xf32>
    %233 = vector.multi_reduction <add>, %232, %cst_121 [1] : vector<16x16xf32> to vector<16xf32>
    %234 = vector.shape_cast %233 : vector<16xf32> to vector<16x1xf32>
    %cst_122 = arith.constant 1.000000e+00 : f32
    %235 = vector.broadcast %cst_122 : f32 to vector<16x1xf32>
    %236 = arith.divf %235, %234 : vector<16x1xf32>
    %237 = vector.broadcast %236 : vector<16x1xf32> to vector<16x16xf32>
    %238 = arith.mulf %232, %237 : vector<16x16xf32>
    %cst_123 = arith.constant dense<0.000000e+00> : vector<8x16xf32>
    %239 = tpu.matmul %222, %238, %cst_123 {dimension_numbers = #tpu.dot_dimension_numbers<[1], [1], [0], [0], [0, 0, 1, 0], [], []>} : vector<8x16xf32>, vector<16x16xf32>, vector<8x16xf32> -> vector<8x16xf32>
    %240 = tpu.concatenate %179, %199, %219, %239 in 0 : vector<8x16xf32>, vector<8x16xf32>, vector<8x16xf32>, vector<8x16xf32> -> vector<32x16xf32>
    %c1_124 = arith.constant 1 : index
    %c0_125 = arith.constant 0 : index
    %c0_126 = arith.constant 0 : index
    %c0_127 = arith.constant 0 : index
    %241 = vector.load %arg6[%c1_124, %c0_125, %c0_126, %c0_127] : memref<2x3x32x32xf32, #tpu.memory_space<vmem>>, vector<1x1x32x32xf32>
    %242 = vector.shape_cast %241 : vector<1x1x32x32xf32> to vector<32x32xf32>
    %cst_128 = arith.constant dense<0.000000e+00> : vector<32x16xf32>
    %243 = tpu.matmul %242, %240, %cst_128 {dimension_numbers = #tpu.dot_dimension_numbers<[1], [0], [0], [1], [0, 0, 1, 1], [], []>} : vector<32x32xf32>, vector<32x16xf32>, vector<32x16xf32> -> vector<32x16xf32>
    %c1_129 = arith.constant 1 : index
    %c2_130 = arith.constant 2 : index
    %c0_131 = arith.constant 0 : index
    %c0_132 = arith.constant 0 : index
    %244 = vector.load %arg7[%c1_129, %c2_130, %c0_131, %c0_132] : memref<2x7x32x1xf32, #tpu.memory_space<vmem>>, vector<1x1x32x1xf32>
    %245 = vector.shape_cast %244 : vector<1x1x32x1xf32> to vector<32x1xf32>
    %246 = vector.broadcast %245 : vector<32x1xf32> to vector<32x16xf32>
    %247 = arith.addf %243, %246 : vector<32x16xf32>
    %248 = arith.addf %141, %247 : vector<32x16xf32>
    %c1_133 = arith.constant 1 : index
    %c3_134 = arith.constant 3 : index
    %c0_135 = arith.constant 0 : index
    %c0_136 = arith.constant 0 : index
    %249 = vector.load %arg7[%c1_133, %c3_134, %c0_135, %c0_136] : memref<2x7x32x1xf32, #tpu.memory_space<vmem>>, vector<1x1x32x1xf32>
    %250 = vector.shape_cast %249 : vector<1x1x32x1xf32> to vector<32x1xf32>
    %251 = vector.broadcast %250 : vector<32x1xf32> to vector<32x16xf32>
    %252 = arith.mulf %248, %251 : vector<32x16xf32>
    %c1_137 = arith.constant 1 : index
    %c4_138 = arith.constant 4 : index
    %c0_139 = arith.constant 0 : index
    %c0_140 = arith.constant 0 : index
    %253 = vector.load %arg7[%c1_137, %c4_138, %c0_139, %c0_140] : memref<2x7x32x1xf32, #tpu.memory_space<vmem>>, vector<1x1x32x1xf32>
    %254 = vector.shape_cast %253 : vector<1x1x32x1xf32> to vector<32x1xf32>
    %255 = vector.broadcast %254 : vector<32x1xf32> to vector<32x16xf32>
    %256 = arith.addf %252, %255 : vector<32x16xf32>
    %c1_141 = arith.constant 1 : index
    %c1_142 = arith.constant 1 : index
    %c0_143 = arith.constant 0 : index
    %c0_144 = arith.constant 0 : index
    %257 = vector.load %arg6[%c1_141, %c1_142, %c0_143, %c0_144] : memref<2x3x32x32xf32, #tpu.memory_space<vmem>>, vector<1x1x32x32xf32>
    %258 = vector.shape_cast %257 : vector<1x1x32x32xf32> to vector<32x32xf32>
    %cst_145 = arith.constant dense<0.000000e+00> : vector<32x16xf32>
    %259 = tpu.matmul %258, %256, %cst_145 {dimension_numbers = #tpu.dot_dimension_numbers<[1], [0], [0], [1], [0, 0, 1, 1], [], []>} : vector<32x32xf32>, vector<32x16xf32>, vector<32x16xf32> -> vector<32x16xf32>
    %c1_146 = arith.constant 1 : index
    %c5_147 = arith.constant 5 : index
    %c0_148 = arith.constant 0 : index
    %c0_149 = arith.constant 0 : index
    %260 = vector.load %arg7[%c1_146, %c5_147, %c0_148, %c0_149] : memref<2x7x32x1xf32, #tpu.memory_space<vmem>>, vector<1x1x32x1xf32>
    %261 = vector.shape_cast %260 : vector<1x1x32x1xf32> to vector<32x1xf32>
    %262 = vector.broadcast %261 : vector<32x1xf32> to vector<32x16xf32>
    %263 = arith.addf %259, %262 : vector<32x16xf32>
    %cst_150 = arith.constant 0.000000e+00 : f32
    %264 = vector.broadcast %cst_150 : f32 to vector<32x16xf32>
    %265 = arith.maximumf %263, %264 : vector<32x16xf32>
    %c1_151 = arith.constant 1 : index
    %c2_152 = arith.constant 2 : index
    %c0_153 = arith.constant 0 : index
    %c0_154 = arith.constant 0 : index
    %266 = vector.load %arg6[%c1_151, %c2_152, %c0_153, %c0_154] : memref<2x3x32x32xf32, #tpu.memory_space<vmem>>, vector<1x1x32x32xf32>
    %267 = vector.shape_cast %266 : vector<1x1x32x32xf32> to vector<32x32xf32>
    %cst_155 = arith.constant dense<0.000000e+00> : vector<32x16xf32>
    %268 = tpu.matmul %267, %265, %cst_155 {dimension_numbers = #tpu.dot_dimension_numbers<[1], [0], [0], [1], [0, 0, 1, 1], [], []>} : vector<32x32xf32>, vector<32x16xf32>, vector<32x16xf32> -> vector<32x16xf32>
    %c1_156 = arith.constant 1 : index
    %c6_157 = arith.constant 6 : index
    %c0_158 = arith.constant 0 : index
    %c0_159 = arith.constant 0 : index
    %269 = vector.load %arg7[%c1_156, %c6_157, %c0_158, %c0_159] : memref<2x7x32x1xf32, #tpu.memory_space<vmem>>, vector<1x1x32x1xf32>
    %270 = vector.shape_cast %269 : vector<1x1x32x1xf32> to vector<32x1xf32>
    %271 = vector.broadcast %270 : vector<32x1xf32> to vector<32x16xf32>
    %272 = arith.addf %268, %271 : vector<32x16xf32>
    %273 = arith.addf %248, %272 : vector<32x16xf32>
    %c0_160 = arith.constant 0 : index
    %c0_161 = arith.constant 0 : index
    %c0_162 = arith.constant 0 : index
    %274 = vector.load %arg8[%c0_160, %c0_161, %c0_162] : memref<2x32x1xf32, #tpu.memory_space<vmem>>, vector<1x32x1xf32>
    %275 = vector.shape_cast %274 : vector<1x32x1xf32> to vector<32x1xf32>
    %276 = vector.broadcast %275 : vector<32x1xf32> to vector<32x16xf32>
    %277 = arith.mulf %273, %276 : vector<32x16xf32>
    %c1_163 = arith.constant 1 : index
    %c0_164 = arith.constant 0 : index
    %c0_165 = arith.constant 0 : index
    %278 = vector.load %arg8[%c1_163, %c0_164, %c0_165] : memref<2x32x1xf32, #tpu.memory_space<vmem>>, vector<1x32x1xf32>
    %279 = vector.shape_cast %278 : vector<1x32x1xf32> to vector<32x1xf32>
    %280 = vector.broadcast %279 : vector<32x1xf32> to vector<32x16xf32>
    %281 = arith.addf %277, %280 : vector<32x16xf32>
    %c0_166 = arith.constant 0 : index
    %c0_167 = arith.constant 0 : index
    %c0_168 = arith.constant 0 : index
    %282 = vector.load %arg9[%c0_166, %c0_167, %c0_168] : memref<1x32x16xf32, #tpu.memory_space<vmem>>, vector<1x32x16xf32>
    %283 = vector.shape_cast %282 : vector<1x32x16xf32> to vector<32x16xf32>
    %284 = vector.shape_cast %281 : vector<32x16xf32> to vector<1x32x16xf32>
    tpu.vector_store %arg9[%c0_166, %c0_167, %c0_168], %284 {strides = array<i32>} : memref<1x32x16xf32, #tpu.memory_space<vmem>>, vector<1x32x16xf32>,
    return
  }
  func.func @transform_0(%arg0: i32) -> (i32, i32, i32) {
    %c0_i32 = arith.constant 0 : i32
    %c0_i32_0 = arith.constant 0 : i32
    %c0_i32_1 = arith.constant 0 : i32
    return %arg0, %c0_i32, %c0_i32_0 : i32, i32, i32
  }
  func.func @transform_1(%arg0: i32) -> (i32, i32, i32) {
    %c0_i32 = arith.constant 0 : i32
    %c0_i32_0 = arith.constant 0 : i32
    %c0_i32_1 = arith.constant 0 : i32
    return %arg0, %c0_i32, %c0_i32_0 : i32, i32, i32
  }
  func.func @transform_2(%arg0: i32) -> (i32, i32) {
    %c0_i32 = arith.constant 0 : i32
    %c0_i32_0 = arith.constant 0 : i32
    %c0_i32_1 = arith.constant 0 : i32
    return %c0_i32, %c0_i32_0 : i32, i32
  }
  func.func @transform_3(%arg0: i32) -> (i32, i32, i32) {
    %c0_i32 = arith.constant 0 : i32
    %c0_i32_0 = arith.constant 0 : i32
    %c0_i32_1 = arith.constant 0 : i32
    %c0_i32_2 = arith.constant 0 : i32
    return %c0_i32, %c0_i32_0, %c0_i32_1 : i32, i32, i32
  }
  func.func @transform_4(%arg0: i32) -> (i32, i32, i32) {
    %c0_i32 = arith.constant 0 : i32
    %c0_i32_0 = arith.constant 0 : i32
    %c0_i32_1 = arith.constant 0 : i32
    %c0_i32_2 = arith.constant 0 : i32
    return %c0_i32, %c0_i32_0, %c0_i32_1 : i32, i32, i32
  }
  func.func @transform_5(%arg0: i32) -> (i32, i32, i32, i32) {
    %c0_i32 = arith.constant 0 : i32
    %c0_i32_0 = arith.constant 0 : i32
    %c0_i32_1 = arith.constant 0 : i32
    %c0_i32_2 = arith.constant 0 : i32
    %c0_i32_3 = arith.constant 0 : i32
    return %c0_i32, %c0_i32_0, %c0_i32_1, %c0_i32_2 : i32, i32, i32, i32
  }
  func.func @transform_6(%arg0: i32) -> (i32, i32, i32, i32) {
    %c0_i32 = arith.constant 0 : i32
    %c0_i32_0 = arith.constant 0 : i32
    %c0_i32_1 = arith.constant 0 : i32
    %c0_i32_2 = arith.constant 0 : i32
    %c0_i32_3 = arith.constant 0 : i32
    return %c0_i32, %c0_i32_0, %c0_i32_1, %c0_i32_2 : i32, i32, i32, i32
  }
  func.func @transform_7(%arg0: i32) -> (i32, i32, i32) {
    %c0_i32 = arith.constant 0 : i32
    %c0_i32_0 = arith.constant 0 : i32
    %c0_i32_1 = arith.constant 0 : i32
    %c0_i32_2 = arith.constant 0 : i32
    return %c0_i32, %c0_i32_0, %c0_i32_1 : i32, i32, i32
  }
  func.func @transform_8(%arg0: i32) -> (i32, i32, i32) {
    %c0_i32 = arith.constant 0 : i32
    %c0_i32_0 = arith.constant 0 : i32
    %c0_i32_1 = arith.constant 0 : i32
    return %arg0, %c0_i32, %c0_i32_0 : i32, i32, i32
  }
}

</mosaic_0001>

<bundles_post_ra>
// kernel: encoder_forward.1
= control target key start
LH: loop header
LB: loop body
LE: loop exit
PB: predicated region body
PF: predicated region fallthrough
CT: control target
= control target key end

     0   :  { %s5881_s0 = inlined_call_operand.hbm [shape: f32[2,32,16], index: 0, kind: input, shape index: {}]   ;;  %s5882_s1 = inlined_call_operand.hbm [shape: f32[2,16,16], index: 1, kind: input, shape index: {}]   ;;  %s5883_s2 = inlined_call_operand.hbm [shape: f32[32,16], index: 2, kind: input, shape index: {}]   ;;  %s5884_s3 = inlined_call_operand.hbm [shape: f32[2,96,32], index: 3, kind: input, shape index: {}]   ;;  %s5885_s4 = inlined_call_operand.hbm [shape: f32[2,96,1], index: 4, kind: input, shape index: {}]   ;;  %s5886_s5 = inlined_call_operand.hbm [shape: f32[2,3,32,32], index: 5, kind: input, shape index: {}]   ;;  %s5887_s6 = inlined_call_operand.hbm [shape: f32[2,7,32,1], index: 6, kind: input, shape index: {}]   ;;  %s5888_s7 = inlined_call_operand.hbm [shape: f32[2,32,1], index: 7, kind: input, shape index: {}]   ;;  %s5889_s8 = inlined_call_operand.hbm [shape: f32[2,32,16], index: 8, kind: output, shape index: {}]  }
   0x1   :  { %5897 = sst [smem:[#allocation24_spill]] %s5881_s0 }
   0x2   :  { %5898 = sst [smem:[#allocation25_spill]] %s5883_s2 }
   0x3   :  { %5899 = sst [smem:[#allocation26_spill]] %s5884_s3 }
   0x4   :  { %5900 = sst [smem:[#allocation27_spill]] %s5885_s4 }
   0x5   :  { %5901 = sst [smem:[#allocation28_spill]] %s5886_s5 }
   0x6   :  { %5902 = sst [smem:[#allocation29_spill]] %s5887_s6 }
   0x7   :  { %13 = vsyncpa [#allocation3], 0 }
   0x8   :  { %15 = vsyncpa [#allocation3 + $0x1], 0 }
   0x9   :  { %16 = vsyncpa [#allocation6], 0 }
   0xa   :  { %18 = vsyncpa [#allocation6 + $0x1], 0 }
   0xb   :  { %19 = vsyncpa [#allocation9], 0 }
   0xc   :  { %20 = vsyncpa [#allocation12], 0 }
   0xd   :  { %21 = vsyncpa [#allocation15], 0 }
   0xe   :  { %22 = vsyncpa [#allocation4], 0 }
   0xf   :  { %24 = vsyncpa [#allocation4 + $0x1], 0  ;;  %s5111_s27 = smov 0   ;;  %s5113_s28 = smov 0  }
  0x10   :  { %s5115_s29 = smov 0   ;;  %s5117_s30 = smov 0  }
  0x11 LB: > { %s5049_s9 = smov [#allocation7]   ;;  %s5132_s11 = sadd.s32 4294967295, %s5047_s30   ;;  %s5047_s30 = sphi %s5117_s30, %s5938_s30   ;;  %s5043_s29 = sphi %s5115_s29, %s5937_s29   ;;  %s5039_s28 = sphi %s5113_s28, %s5936_s28   ;;  %s5035_s27 = sphi %s5111_s27, %s5935_s27  }
  0x12   : > { %s251_s10 = sshll.u32 %s5049_s9, 4  ;;  %p3971_p0 = scmp.ge.s32.totalorder %s5047_s30, 1  ;;  %s5137_s10 = int_to_ptr.vmem [resolvable:$true] %s251_s10 }
  0x13   : > { %p5890_p1 = scmp.eq.s32.totalorder %s5132_s11, 0  ;;  %p239_p2 = scmp.lt.s32.totalorder %s5047_s30, 3 }
  0x14   : > { %s5050_s13 = smov [#allocation8]   ;;  %s5051_s16 = smov [#allocation11]  }
  0x15   : > { %p5139_p3 = pnand %p3971_p0, %p239_p2  ;;  %s264_s14 = sshll.u32 %s5050_s13, 4  ;;  %s5152_s14 = int_to_ptr.vmem [resolvable:$true] %s264_s14 }
  0x16   : > { %s290_s17 = sshll.u32 %s5051_s16, 4  ;;  %s5905_s2 = sld [smem:[#allocation25_spill]]  ;;  %s5154_s17 = int_to_ptr.vmem [resolvable:$true] %s290_s17 }
  0x17   : > { %s5903_s12 = scalar_select %p5139_p3, 1, 0 }
  0x18   : > { %p4577_p5 = pneg %p5139_p3 }
  0x1a   : > { %p5148_p6 = pnand %p4577_p5, %p5890_p1 }
  0x1c   : > { %s4733_s20 = scalar_lea.hbm %s5905_s2, 512  ;;  %p5164_p8 = pneg %p5148_p6 }
  0x1d   : > { %p4734_p7 = scmp.ne.s32.totalorder %s5905_s2, %s4733_s20  ;;  %p4740_p11 = scmp.lt.u32.totalorder %s4733_s20, %s5905_s2 }
  0x1f   : > { %p4736_p9 = pnand %p5164_p8, %p4734_p7 }
  0x21   : > { %p4737_p10 = pneg %p4736_p9 }
  0x23   : > { %p4742_p12 = pnand %p4740_p11, %p4737_p10 }
  0x25   : > { %4745 = shalt.err (!%p4742_p12)
}
  0x26   : > { %s4746_s26 = scalar_lea.vmem %s5137_s10, 512  ;;  %p4754_p5 = scmp.lt.s32.totalorder %s5137_s10, %s5137_s10 }
  0x27   : > { %p4747_p13 = scmp.ne.s32.totalorder %s5137_s10, %s4746_s26  ;;  %p4755_p4 = scmp.lt.s32.totalorder %s4746_s26, %s4746_s26 }
  0x29   : > { %p4749_p0 = pnand %p4747_p13, %p5164_p8  ;;  %p4756_p7 = por %p4755_p4, %p4754_p5 }
  0x2b   : > { %p4750_p2 = pneg %p4749_p0 }
  0x2d   : > { %p4757_p9 = pnand %p4756_p7, %p4750_p2 }
  0x2f   : > { %4760 = shalt.err (!%p4757_p9)
}
  0x30   : > { %s5892_s9 = smov 128   ;;  %s5894_s13 = smov 8  }
  0x31   : > { %4580 = dma.hbm_to_vmem [thread:$0]  (!%p5148_p6), %s5905_s2, 512, %s5137_s10, [#allocation6], %s5892_s9, %s5892_s9, %s5894_s13  }
  0x32   : > { %s5907_s3 = sld [smem:[#allocation26_spill]] }
  0x38   : > { %s4761_s21 = scalar_lea.hbm %s5907_s3, 3072 }
  0x39   : > { %p4762_p4 = scmp.ne.s32.totalorder %s5907_s3, %s4761_s21  ;;  %p4768_p12 = scmp.lt.u32.totalorder %s4761_s21, %s5907_s3 }
  0x3b   : > { %p4764_p10 = pnand %p4762_p4, %p5164_p8 }
  0x3d   : > { %p4765_p11 = pneg %p4764_p10 }
  0x3f   : > { %p4770_p13 = pnand %p4768_p12, %p4765_p11 }
  0x41   : > { %4773 = shalt.err (!%p4770_p13)
}
  0x42   : > { %s4774_s10 = scalar_lea.vmem %s5152_s14, 3072  ;;  %p4782_p7 = scmp.lt.s32.totalorder %s5152_s14, %s5152_s14 }
  0x43   : > { %p4775_p0 = scmp.ne.s32.totalorder %s5152_s14, %s4774_s10  ;;  %p4783_p9 = scmp.lt.s32.totalorder %s4774_s10, %s4774_s10 }
  0x45   : > { %p4777_p2 = pnand %p4775_p0, %p5164_p8  ;;  %p4784_p4 = por %p4783_p9, %p4782_p7 }
  0x47   : > { %p4778_p5 = pneg %p4777_p2 }
  0x49   : > { %p4785_p10 = pnand %p4784_p4, %p4778_p5 }
  0x4b   : > { %4788 = shalt.err (!%p4785_p10)
}
  0x4c   : > { %4583 = dma.hbm_to_vmem [thread:$0]  (!%p5148_p6), %s5907_s3, 3072, %s5152_s14, [#allocation9], %s5892_s9, %s5892_s9, %s5894_s13  }
  0x4d   : > { %s5908_s5 = sld [smem:[#allocation28_spill]] }
  0x53   : > { %s4789_s21 = scalar_lea.hbm %s5908_s5, 3072 }
  0x54   : > { %p4790_p11 = scmp.ne.s32.totalorder %s5908_s5, %s4789_s21  ;;  %p4796_p0 = scmp.lt.u32.totalorder %s4789_s21, %s5908_s5 }
  0x56   : > { %p4792_p12 = pnand %p4790_p11, %p5164_p8 }
  0x58   : > { %p4793_p13 = pneg %p4792_p12 }
  0x5a   : > { %p4798_p2 = pnand %p4796_p0, %p4793_p13 }
  0x5c   : > { %4801 = shalt.err (!%p4798_p2)
}
  0x5d   : > { %s4802_s14 = scalar_lea.vmem %s5154_s17, 3072  ;;  %p4810_p4 = scmp.lt.s32.totalorder %s5154_s17, %s5154_s17 }
  0x5e   : > { %p4803_p5 = scmp.ne.s32.totalorder %s5154_s17, %s4802_s14  ;;  %p4811_p10 = scmp.lt.s32.totalorder %s4802_s14, %s4802_s14 }
  0x60   : > { %p4805_p7 = pnand %p4803_p5, %p5164_p8  ;;  %p4812_p11 = por %p4811_p10, %p4810_p4 }
  0x62   : > { %p4806_p9 = pneg %p4805_p7 }
  0x64   : > { %p4813_p12 = pnand %p4812_p11, %p4806_p9 }
  0x66   : > { %4816 = shalt.err (!%p4813_p12)
}
  0x67   : > { %4589 = dma.hbm_to_vmem [thread:$0]  (!%p5148_p6), %s5908_s5, 3072, %s5154_s17, [#allocation12], %s5892_s9, %s5892_s9, %s5894_s13  }
  0x68   : > { %s5054_s18 = smov [#allocation10]   ;;  %s5055_s20 = smov [#allocation13]  }
  0x69   : > { %s277_s19 = sshll.u32 %s5054_s18, 4  ;;  %s303_s21 = sshll.u32 %s5055_s20, 4  ;;  %s278_s19 = int_to_ptr.vmem [resolvable:$true] %s277_s19  ;;  %s304_s21 = int_to_ptr.vmem [resolvable:$true] %s303_s21 }
  0x6a   : > { %s5909_s4 = sld [smem:[#allocation27_spill]] }
  0x70   : > { %s4817_s25 = scalar_lea.hbm %s5909_s4, 3072 }
  0x71   : > { %p4818_p13 = scmp.ne.s32.totalorder %s5909_s4, %s4817_s25  ;;  %p4824_p5 = scmp.lt.u32.totalorder %s4817_s25, %s5909_s4 }
  0x73   : > { %p4820_p0 = pnand %p4818_p13, %p5164_p8 }
  0x75   : > { %p4821_p2 = pneg %p4820_p0 }
  0x77   : > { %p4826_p7 = pnand %p4824_p5, %p4821_p2 }
  0x79   : > { %4829 = shalt.err (!%p4826_p7)
}
  0x7a   : > { %s4830_s17 = scalar_lea.vmem %s278_s19, 3072  ;;  %p4838_p11 = scmp.lt.s32.totalorder %s278_s19, %s278_s19 }
  0x7b   : > { %p4831_p9 = scmp.ne.s32.totalorder %s278_s19, %s4830_s17  ;;  %p4839_p12 = scmp.lt.s32.totalorder %s4830_s17, %s4830_s17 }
  0x7d   : > { %p4833_p4 = pnand %p4831_p9, %p5164_p8  ;;  %p4840_p1 = por %p4839_p12, %p4838_p11 }
  0x7f   : > { %p4834_p10 = pneg %p4833_p4 }
  0x81   : > { %p4841_p3 = pnand %p4840_p1, %p4834_p10 }
  0x83   : > { %4844 = shalt.err (!%p4841_p3)
}
  0x84   : > { %4586 = dma.hbm_to_vmem [thread:$0]  (!%p5148_p6), %s5909_s4, 3072, %s278_s19, [#allocation9], %s5892_s9, %s5892_s9, %s5894_s13  }
  0x85   : > { %s5910_s6 = sld [smem:[#allocation29_spill]] }
  0x8b   : > { %s4845_s22 = scalar_lea.hbm %s5910_s6, 7168 }
  0x8c   : > { %p4846_p1 = scmp.ne.s32.totalorder %s5910_s6, %s4845_s22  ;;  %p4852_p0 = scmp.lt.u32.totalorder %s4845_s22, %s5910_s6 }
  0x8e   : > { %p4848_p3 = pnand %p4846_p1, %p5164_p8 }
  0x90   : > { %p4849_p13 = pneg %p4848_p3 }
  0x92   : > { %p4854_p2 = pnand %p4852_p0, %p4849_p13 }
  0x94   : > { %4857 = shalt.err (!%p4854_p2)
}
  0x95   : > { %s4858_s10 = scalar_lea.vmem %s304_s21, 7168  ;;  %p4866_p4 = scmp.lt.s32.totalorder %s304_s21, %s304_s21 }
  0x96   : > { %p4859_p5 = scmp.ne.s32.totalorder %s304_s21, %s4858_s10  ;;  %p4867_p10 = scmp.lt.s32.totalorder %s4858_s10, %s4858_s10 }
  0x98   : > { %p4861_p7 = pnand %p4859_p5, %p5164_p8  ;;  %p4868_p11 = por %p4867_p10, %p4866_p4 }
  0x9a   : > { %p4862_p9 = pneg %p4861_p7 }
  0x9c   : > { %p4869_p12 = pnand %p4868_p11, %p4862_p9 }
  0x9e   : > { %4872 = shalt.err (!%p4869_p12)
}
  0x9f   : > { %4592 = dma.hbm_to_vmem [thread:$0]  (!%p5148_p6), %s5910_s6, 7168, %s304_s21, [#allocation12], %s5892_s9, %s5892_s9, %s5894_s13  }
  0xa0   : > { %s5056_s2 = smov [#allocation14]   ;;  %s4873_s22 = scalar_lea.hbm %s5888_s7, 1024 }
  0xa1   : > { %s316_s16 = sshll.u32 %s5056_s2, 4  ;;  %p4874_p1 = scmp.ne.s32.totalorder %s5888_s7, %s4873_s22  ;;  %s317_s16 = int_to_ptr.vmem [resolvable:$true] %s316_s16 }
  0xa2   : > { %p4880_p0 = scmp.lt.u32.totalorder %s4873_s22, %s5888_s7 }
  0xa3   : > { %p4876_p3 = pnand %p4874_p1, %p5164_p8 }
  0xa5   : > { %p4877_p13 = pneg %p4876_p3 }
  0xa7   : > { %p4882_p2 = pnand %p4880_p0, %p4877_p13 }
  0xa9   : > { %4885 = shalt.err (!%p4882_p2)
}
  0xaa   : > { %s4886_s21 = scalar_lea.vmem %s317_s16, 1024  ;;  %p4894_p4 = scmp.lt.s32.totalorder %s317_s16, %s317_s16 }
  0xab   : > { %p4887_p5 = scmp.ne.s32.totalorder %s317_s16, %s4886_s21  ;;  %p4895_p10 = scmp.lt.s32.totalorder %s4886_s21, %s4886_s21 }
  0xad   : > { %p4889_p7 = pnand %p4887_p5, %p5164_p8  ;;  %p4896_p11 = por %p4895_p10, %p4894_p4 }
  0xaf   : > { %p4890_p9 = pneg %p4889_p7 }
  0xb1   : > { %p4897_p12 = pnand %p4896_p11, %p4890_p9 }
  0xb3   : > { %4900 = shalt.err (!%p4897_p12)
}
  0xb4   : > { %4595 = dma.hbm_to_vmem [thread:$0]  (!%p5148_p6), %s5888_s7, 1024, %s317_s16, [#allocation15], %s5892_s9, %s5892_s9, %s5894_s13  }
  0xb5   : > { %s3970_s15 = sadd.s32 4294967294, %s5047_s30   ;;  %s5305_s23 = sadd.s32 1, %s5047_s30  }
  0xb6   : > { %s34_s17 = ssub.s32 %s5047_s30, %s5305_s23  ;;  %s37_s2 = sadd.s32 1, %s5043_s29 }
  0xb7   : > { %p35_p8 = scmp.eq.s32.totalorder %s34_s17, 0  ;;  %p44_p1 = scmp.ne.s32.totalorder %s5043_s29, %s5039_s28 }
  0xb8   : > { %p45_p3 = scmp.eq.s32.totalorder %s5047_s30, 0  ;;  %p50_p13 = scmp.ne.s32.totalorder %s5039_s28, %s5035_s27 }
  0xb9   : > { %s5316_s18 = scalar_select %p35_p8, %s5043_s29, %s37_s2  }
  0xba   : > { %p5318_p0 = por %p45_p3, %p44_p1  ;;  %p5912_p2 = scmp.eq.s32.totalorder %s5132_s11, 0 }
  0xbb   : > { %p226_p5 = scmp.eq.s32.totalorder %s5132_s11, 1  ;;  %p232_p7 = scmp.eq.s32.totalorder %s3970_s15, 1 }
  0xbc   : > { %p5324_p6 = por %p5912_p2, %p50_p13  ;;  %p4613_p9 = scmp.lt.s32.totalorder %s5047_s30, 2 }
  0xbd   : > { %s5331_s22 = sand.u32 1, %s5043_s29   ;;  %p5333_p4 = por %p226_p5, %p44_p1 }
  0xbe   : > { %p5337_p10 = por %p232_p7, %p50_p13  ;;  %s3979_s26 = sshll.u32 %s5331_s22, 5 }
  0xbf   : > { %s5914_s24 = scalar_select %p5333_p4, 1, 0 }
  0xc0   : > { %s5915_s25 = scalar_select %p5337_p10, 1, 0 }
  0xc1   : > { %s4088_s14 = sshll.u32 %s5047_s30, 9  ;;  %s5916_s0 = sld [smem:[#allocation24_spill]] }
  0xc2   : > { %s334_s15 = scalar_lea.vmem [#allocation2], %s3979_s26  ;;  %p5352_p11 = pnand %p4613_p9, %p5318_p0 }
  0xc3   : > { %s341_s17 = sshll.u32 %s334_s15, 4  ;;  %s3982_s13 = sshll.u32 %s5331_s22, 4  ;;  %s5348_s17 = int_to_ptr.vmem [resolvable:$true] %s341_s17 }
  0xc4   : > { %s331_s21 = scalar_lea.sflag [#allocation3], %s5331_s22  ;;  %p4903_p8 = pneg %p5352_p11 }
  0xc7   : > { %s5346_s19 = scalar_lea.hbm %s5916_s0, %s4088_s14  ;;  %s4906_s20 = scalar_lea.hbm %s5916_s0, 1024 }
  0xc8   : > { %s4901_s14 = scalar_lea.hbm %s5346_s19, 512  ;;  %p4907_p13 = scmp.lt.u32.totalorder %s5346_s19, %s5916_s0 }
  0xc9   : > { %p4902_p12 = scmp.ne.s32.totalorder %s5346_s19, %s4901_s14  ;;  %p4908_p0 = scmp.lt.u32.totalorder %s4906_s20, %s4901_s14 }
  0xca   : > { %p4910_p5 = scmp.lt.u32.totalorder %s4901_s14, %s5346_s19 }
  0xcb   : > { %p4904_p1 = pnand %p4903_p8, %p4902_p12  ;;  %p4909_p2 = por %p4908_p0, %p4907_p13 }
  0xcd   : > { %p4905_p3 = pneg %p4904_p1  ;;  %p4911_p7 = por %p4910_p5, %p4909_p2 }
  0xcf   : > { %p4912_p9 = pnand %p4911_p7, %p4905_p3 }
  0xd1   : > { %4915 = shalt.err (!%p4912_p9)
}
  0xd2   : > { %s4916_s9 = scalar_lea.vmem %s5348_s17, 512  ;;  %s5057_s26 = smov [#allocation2]  }
  0xd3   : > { %p4917_p12 = scmp.ne.s32.totalorder %s5348_s17, %s4916_s9  ;;  %s4921_s10 = sshll.u32 %s5057_s26, 4  ;;  %s4922_s10 = int_to_ptr.vmem [resolvable:$false] %s4921_s10 }
  0xd4   : > { %s4923_s3 = scalar_lea.vmem %s4922_s10, 1024  ;;  %p4924_p4 = scmp.lt.s32.totalorder %s5348_s17, %s4922_s10 }
  0xd5   : > { %p4919_p1 = pnand %p4917_p12, %p4903_p8  ;;  %p4925_p13 = scmp.lt.s32.totalorder %s4923_s3, %s4916_s9 }
  0xd7   : > { %p4920_p10 = pneg %p4919_p1  ;;  %p4926_p0 = por %p4925_p13, %p4924_p4 }
  0xd9   : > { %p4927_p2 = pnand %p4926_p0, %p4920_p10 }
  0xdb   : > { %4930 = shalt.err (!%p4927_p2)
}
  0xdc   : > { %s5918_s14 = smov 8   ;;  %s5919_s20 = smov 128  }
  0xdd   : > { %4599 = dma.hbm_to_vmem [thread:$0]  (!%p5352_p11), %s5346_s19, 512, %s5348_s17, %s331_s21, %s5919_s20, %s5919_s20, %s5918_s14  }
  0xde   : > { %s4089_s15 = sshll.u32 %s5047_s30, 8  ;;  %s355_s3 = scalar_lea.vmem [#allocation5], %s3982_s13 }
  0xdf   : > { %s5393_s10 = scalar_lea.hbm %s5882_s1, %s4089_s15  ;;  %s362_s0 = sshll.u32 %s355_s3, 4  ;;  %s5397_s0 = int_to_ptr.vmem [resolvable:$true] %s362_s0 }
  0xe0   : > { %s5920_s4 = sand.u32 1, %s5047_s30   ;;  %s4931_s6 = scalar_lea.hbm %s5393_s10, 256 }
  0xe1   : > { %s5401_s5 = scalar_lea.sflag [#allocation6], %s5920_s4  ;;  %p4932_p4 = scmp.ne.s32.totalorder %s5393_s10, %s4931_s6 }
  0xe2   : > { %s4936_s22 = scalar_lea.hbm %s5882_s1, 512  ;;  %p4937_p5 = scmp.lt.u32.totalorder %s5393_s10, %s5882_s1 }
  0xe3   : > { %p4934_p10 = pnand %p4932_p4, %p4903_p8  ;;  %p4938_p7 = scmp.lt.u32.totalorder %s4936_s22, %s4931_s6 }
  0xe4   : > { %p4940_p12 = scmp.lt.u32.totalorder %s4931_s6, %s5393_s10 }
  0xe5   : > { %p4935_p3 = pneg %p4934_p10  ;;  %p4939_p9 = por %p4938_p7, %p4937_p5 }
  0xe7   : > { %p4941_p1 = por %p4940_p12, %p4939_p9 }
  0xe9   : > { %p4942_p13 = pnand %p4941_p1, %p4935_p3 }
  0xeb   : > { %4945 = shalt.err (!%p4942_p13)
}
  0xec   : > { %s4946_s4 = scalar_lea.vmem %s5397_s0, 256  ;;  %s5058_s13 = smov [#allocation5]  }
  0xed   : > { %p4947_p0 = scmp.ne.s32.totalorder %s5397_s0, %s4946_s4  ;;  %s4951_s26 = sshll.u32 %s5058_s13, 4  ;;  %s4952_s26 = int_to_ptr.vmem [resolvable:$false] %s4951_s26 }
  0xee   : > { %s4953_s9 = scalar_lea.vmem %s4952_s26, 512  ;;  %p4954_p10 = scmp.lt.s32.totalorder %s5397_s0, %s4952_s26 }
  0xef   : > { %p4949_p2 = pnand %p4947_p0, %p4903_p8  ;;  %p4955_p5 = scmp.lt.s32.totalorder %s4953_s9, %s4946_s4 }
  0xf1   : > { %p4950_p4 = pneg %p4949_p2  ;;  %p4956_p7 = por %p4955_p5, %p4954_p10 }
  0xf3   : > { %p4957_p9 = pnand %p4956_p7, %p4950_p4 }
  0xf5   : > { %4960 = shalt.err (!%p4957_p9)
}
  0xf6   : > { %4602 = dma.hbm_to_vmem [thread:$0]  (!%p5352_p11), %s5393_s10, 256, %s5397_s0, %s5401_s5, %s5919_s20, %s5919_s20, %s5918_s14  }
  0xf7   : > { %p5921_p8 = scmp.ne.s32.totalorder %s5903_s12, 0 }
  0xf8   : > { %s5433_s6 = sand.u32 (!%p5921_p8), 1, %s5039_s28  }
  0xf9   : > { %374 = sbr.rel (%p5921_p8) target bundleno = 5731 (0x1663), region = 52  ;;  %s3986_s3 = sshll.u32 (!%p5921_p8), %s5433_s6, 5 }
  0xfa   : > { %s377_s19 = scalar_lea.sflag (!%p5921_p8), [#allocation3], %s5433_s6  ;;  %s5439_s2 = scalar_lea.vmem (!%p5921_p8), [#allocation2], %s3986_s3 }
 0x100   : > { %5006 = dma.done.wait (%p5324_p6), %s377_s19, 512  }
 0x101   : > { %5008 = vsyncadd (%p5324_p6), %s377_s19, 4294966784  ;;  %s385_s0 = sand.u32 1, %s5132_s11   ;;  %s3987_s5 = sshll.u32 %s5433_s6, 4 }
 0x102   : > { %s386_s12 = scalar_lea.sflag [#allocation6], %s385_s0  ;;  %s5447_s14 = scalar_lea.vmem [#allocation5], %s3987_s5 }
 0x103   : > { %5010 = dma.done.wait (%p5324_p6), %s386_s12, 256  }
 0x104   : > { %5012 = vsyncadd (%p5324_p6), %s386_s12, 4294967040  ;;  %p5922_p11 = scmp.eq.s32.totalorder %s5132_s11, 0 }
 0x106   : > { %5014 = dma.done.wait (%p5922_p11), [#allocation6], 512   ;;  %p5923_p3 = pmov %p5922_p11 }
 0x108   : > { %5016 = vsyncadd (%p5923_p3), [#allocation6], 4294966784  ;;  %p5924_p12 = pmov %p5923_p3 }
 0x109   : > { %p5925_p1 = pmov %p5923_p3 }
 0x10a   : > { %5018 = dma.done.wait (%p5924_p12), [#allocation9], 6144  }
 0x10b   : > { %5020 = vsyncadd (%p5925_p1), [#allocation9], 4294961152  ;;  %p5926_p13 = pmov %p5925_p1 }
 0x10c   : > { %p5927_p0 = pmov %p5925_p1 }
 0x10d   : > { %5022 = dma.done.wait (%p5926_p13), [#allocation12], 10240  }
 0x10e   : > { %5024 = vsyncadd (%p5927_p0), [#allocation12], 4294957056  ;;  %p5928_p6 = pmov %p5927_p0 }
 0x10f   : > { %p5929_p2 = pmov %p5927_p0 }
 0x110   : > { %5026 = dma.done.wait (%p5928_p6), [#allocation15], 1024  }
 0x111   : > { %5028 = vsyncadd (%p5929_p2), [#allocation15], 4294966272  ;;  %v5059_v0 = vmov 0   ;;  %v500_v1 = vld [vmem:[#allocation13 + $0x20] sm:$0xff]  ;;  %v501_v3 = vld [vmem:[#allocation13 + $0x28] sm:$0xff]  ;;  %vm612_vm0 = vcmask 261120  }
 0x112   : > { %4668 = vset.pattern.permute.xlu1 %v5059_v0  ;;  %4667 = vset.pattern.permute.xlu0 %v5059_v0  ;;  %v471_v2 = vld [vmem:[#allocation13] sm:$0xff]  ;;  %v472_v4 = vld [vmem:[#allocation13 + $0x8] sm:$0xff]  ;;  %v474_v5 = vld [vmem:[#allocation13 + $0x18] sm:$0xff]  ;;  %vm806_vm1 = vcmask 64512   ;;  %vm892_vm3 = vcmask 130048   ;;  %vm5061_vm5 = vmmov 0  }
 0x113   : > { %506 = vperm.xlu1 %4668, %v500_v1   ;;  %477 = vperm.xlu0 %4667, %v471_v2   ;;  %v473_v6 = vld [vmem:[#allocation13 + $0x10] sm:$0xff]  ;;  %v503_v7 = vld [vmem:[#allocation13 + $0x38] sm:$0xff]  ;;  %v544_v9 = vld [vmem:[#allocation10 + $0x20] sm:$0xff]  ;;  %s4090_s16 = sshll.u32 %s5132_s11, 9  ;;  %s450_s20 = scalar_lea.vmem [#allocation16], %s3986_s3 }
 0x114   : > { %v502_v8 = vld [vmem:[#allocation13 + $0x30] sm:$0xff]  ;;  %v540_v10 = vld [vmem:[#allocation10] sm:$0xff]  ;;  %v452_v13 = vld [vmem:[%s5439_s2 + $0x8] sm:$0xff]  ;;  %s3817_s10 = sshll.u32 %s450_s20, 4  ;;  %s5833_s21 = scalar_lea.hbm %s5889_s8, %s4090_s16  ;;  %s5835_s10 = int_to_ptr.vmem [resolvable:$true] %s3817_s10 }
 0x115   : > { %v528_v11 = vld [vmem:[#allocation8] sm:$0xff]  ;;  %v456_v16 = vmul.f32 5.656854, %v452_v13  ;;  %v460_v17 = vld [vmem:[#allocation7 + $0x8] sm:$0xff]  ;;  %v454_v21 = vld [vmem:[%s5439_s2 + $0x18] sm:$0xff]  ;;  %s3804_s11 = scalar_lea.sflag [#allocation4], %s5433_s6 }
 0x116   : > { %4227 = vmatprep.mubr.msk.f32.mxu0 %vm612_vm0, %v528_v11  ;;  %v451_v12 = vld [vmem:[%s5439_s2] sm:$0xff]  ;;  %v453_v22 = vld [vmem:[%s5439_s2 + $0x10] sm:$0xff]  ;;  %v458_v25 = vmul.f32 5.656854, %v454_v21  ;;  %v462_v29 = vld [vmem:[#allocation7 + $0x18] sm:$0xff]  ;;  %s4961_s15 = scalar_lea.vmem %s5835_s10, 512 }
 0x117   : > { %511 = vperm.xlu1 %4668, %v501_v3   ;;  %482 = vperm.xlu0 %4667, %v472_v4   ;;  %v455_v14 = vmul.f32 5.656854, %v451_v12  ;;  %v459_v15 = vld [vmem:[#allocation7] sm:$0xff]  ;;  %v5476_v23 = vadd.f32 %v460_v17, %v456_v16  ;;  %v457_v26 = vmul.f32 5.656854, %v453_v22  ;;  %v461_v30 = vld [vmem:[#allocation7 + $0x10] sm:$0xff]  ;;  %vm5534_vm6 = vmpackc.low %vm892_vm3, %vm892_vm3  ;;  %p4962_p4 = scmp.ne.s32.totalorder %s5835_s10, %s4961_s15 }
 0x118   : > { %v5480_v32 = vadd.f32 %v462_v29, %v458_v25  ;;  %v529_v46 = vld [vmem:[#allocation8 + $0x8] sm:$0xff]  ;;  %v530_v47 = vld [vmem:[#allocation8 + $0x10] sm:$0xff]  ;;  %v531_v48 = vld [vmem:[#allocation8 + $0x18] sm:$0xff]  ;;  %p5932_p10 = scmp.ne.s32.totalorder %s5914_s24, 0  ;;  %s5063_s4 = smov [#allocation16]  }
 0x119   : > { %v5472_v18 = vadd.f32 %v459_v15, %v455_v14  ;;  %v5482_v33 = vadd.f32 %v461_v30, %v457_v26  ;;  %v532_v49 = vld [vmem:[#allocation8 + $0x20] sm:$0xff]  ;;  %v533_v50 = vld [vmem:[#allocation8 + $0x28] sm:$0xff]  ;;  %v534_v63 = vld [vmem:[#allocation8 + $0x30] sm:$0xff]  ;;  %s4965_s13 = sshll.u32 %s5063_s4, 4  ;;  %s4966_s13 = int_to_ptr.vmem [resolvable:$false] %s4965_s13 }
 0x11a   : > { %v535_v0 = vld [vmem:[#allocation8 + $0x38] sm:$0xff]  ;;  %v536_v1 = vld [vmem:[#allocation8 + $0x40] sm:$0xff]  ;;  %v537_v2 = vld [vmem:[#allocation8 + $0x48] sm:$0xff]  ;;  %p4963_p5 = pnand %p4962_p4, %p5932_p10  ;;  %s4967_s26 = scalar_lea.vmem %s4966_s13, 1024 }
 0x11b   : > { %492 = vperm.xlu1 %4668, %v474_v5   ;;  %487 = vperm.xlu0 %4667, %v473_v6   ;;  %v5506_v3 = vld [vmem:[%s5447_s14 + $0x8] sm:$0xff]  ;;  %v5509_v4 = vld [vmem:[%s5447_s14] sm:$0xff]  ;;  %p4968_p9 = scmp.lt.s32.totalorder %s5835_s10, %s4966_s13  ;;  %p4969_p8 = scmp.lt.s32.totalorder %s4967_s26, %s4961_s15 }
 0x11c   : > { %vm470_vm2 = vcmp.eq.f32.partialorder %v5506_v3, 0.0  ;;  %vm469_vm4 = vcmp.eq.f32.partialorder %v5509_v4, 0.0  ;;  %v541_v13 = vld [vmem:[#allocation10 + $0x8] sm:$0xff]  ;;  %p4964_p7 = pneg %p4963_p5 }
 0x11d   : > { %v545_v26 = vld [vmem:[#allocation10 + $0x28] sm:$0xff]  ;;  %p4970_p11 = por %p4969_p8, %p4968_p9 }
 0x11f   : > { %521 = vperm.xlu1 %4668, %v503_v7   ;;  %516 = vperm.xlu0 %4667, %v502_v8   ;;  %p4971_p3 = pnand %p4970_p11, %p4964_p7 }
 0x123   : > { %574 = vperm.xlu1 %4668, %v544_v9   ;;  %554 = vperm.xlu0 %4667, %v540_v10  }
 0x192   : > { %v507_v19 = vpop.permute.xlu1 %506  ;;  %v478_v20 = vpop.permute.xlu0 %477 }
 0x193   : > { %v495_v24 = vmul.f32 %v478_v20, %v5472_v18 }
 0x195   : > { %v524_v34 = vadd.f32 %v507_v19, %v495_v24 }
 0x196   : > { %v512_v27 = vpop.permute.xlu1 %511  ;;  %v483_v28 = vpop.permute.xlu0 %482 }
 0x197   : > { %v496_v31 = vmul.f32 %v483_v28, %v5476_v23  ;;  %v548_v28 = vld [vmem:[#allocation10 + $0x40] sm:$0xff] }
 0x199   : > { %v525_v35 = vadd.f32 %v512_v27, %v496_v31 }
 0x19a   : > { %v493_v36 = vpop.permute.xlu1 %492  ;;  %v488_v37 = vpop.permute.xlu0 %487 }
 0x19b   : > { %v4451_v38 = vpack.c.bf16 %v525_v35, %v524_v34  ;;  %v498_v39 = vmul.f32 %v493_v36, %v5480_v32  ;;  %v497_v40 = vmul.f32 %v488_v37, %v5482_v33  ;;  %v5060_v34 = vmov 0.0|0.0  }
 0x19c   : > { %v5062_v35 = vmov 0.0  }
 0x19d   : > { %4452 = vmatprep.subr.bf16.mxu0 %v4451_v38 }
 0x19e   : > { %v522_v41 = vpop.permute.xlu1 %521  ;;  %v517_v42 = vpop.permute.xlu0 %516  ;;  %4454 = vmatpush3.bf16.msra.mxu0 %v4451_v38 }
 0x19f   : > { %v527_v43 = vadd.f32 %v522_v41, %v498_v39  ;;  %v526_v44 = vadd.f32 %v517_v42, %v497_v40 }
 0x1a1   : > { %v4455_v45 = vpack.c.bf16 %v527_v43, %v526_v44 }
 0x1a2   : > { %v555_v52 = vpop.permute.xlu0 %554  ;;  %v575_v58 = vpop.permute.xlu1 %574 }
 0x1a3   : > { %4456 = vmatprep.subr.bf16.mxu0 %v4455_v45 }
 0x1a4   : > { %4458 = vmatpush3.bf16.msra.mxu0 %v4455_v45 }
 0x1a5   : > { %4467 = vmatprep.subr.bf16.mxu0 %v5060_v34 }
 0x1a7   : > { %4228 = vmatmul.mubr.msk.f32.vlgmr.msra.gmra.mrb[0].mxu0 %vm612_vm0, %v529_v46 }
 0x1a8   : > { %4230 = vmatprep.mubr.msk.f32.mxu0 %vm612_vm0, %v530_v47 }
 0x1ab   : > { %4231 = vmatmul.mubr.msk.f32.gmra.mrb[2].mxu0 %vm612_vm0, %v531_v48 }
 0x1ac   : > { %4233 = vmatprep.mubr.msk.f32.mxu0 %vm612_vm0, %v532_v49 }
 0x1af   : > { %4234 = vmatmul.mubr.msk.f32.gmra.mrb[4].mxu0 %vm612_vm0, %v533_v50 }
 0x1b0   : > { %4236 = vmatprep.mubr.msk.f32.mxu0 %vm612_vm0, %v534_v63 }
 0x1b3   : > { %4237 = vmatmul.mubr.msk.f32.gmra.mrb[6].mxu0 %vm612_vm0, %v535_v0  ;;  %v542_v0 = vld [vmem:[#allocation10 + $0x10] sm:$0xff] }
 0x1b4   : > { %4239 = vmatprep.mubr.msk.f32.mxu0 %vm612_vm0, %v536_v1  ;;  %v549_v1 = vld [vmem:[#allocation10 + $0x48] sm:$0xff] }
 0x1b7   : > { %4240 = vmatmul.mubr.msk.f32.gmra.mrb[8].mxu0 %vm612_vm0, %v537_v2  ;;  %v543_v2 = vld [vmem:[#allocation10 + $0x18] sm:$0xff] }
 0x27a   : > { %v5491_v51 = vpop.f32.mrb[0].mxu0 }
 0x27b   : > { %v715_v53 = vpop.f32.mrb[1].mxu0 }
 0x27c   : > { %v716_v54 = vadd.f32 %v715_v53, %v555_v52 }
 0x27e   : > { %774 = vxpose.xlu0.b32.start.end [1/1] (short) (narrow) %v716_v54, 16  ;;  %v5493_v55 = vpop.f32.mrb[2].mxu0 }
 0x27f   : > { %v5495_v56 = vpop.f32.mrb[3].mxu0 }
 0x282   : > { %v5497_v57 = vpop.f32.mrb[4].mxu0 }
 0x283   : > { %v735_v59 = vpop.f32.mrb[5].mxu0 }
 0x284   : > { %v736_v60 = vadd.f32 %v735_v59, %v575_v58 }
 0x286   : > { %4245 = vmatprep.subr.mxu1 %v736_v60  ;;  %v5521_v27 = vpop.f32.mrb[6].mxu0 }
 0x287   : > { %4246 = vmatpush3.msra.mxu1 %v736_v60  ;;  %v5523_v29 = vpop.f32.mrb[7].mxu0 }
 0x288   : > { %4459 = vmatprep.subr.bf16.mxu1 %v5060_v34 }
 0x28a   : > { %v5525_v30 = vpop.f32.mrb[8].mxu0 }
 0x28b   : > { %v755_v31 = vpop.f32.mrb[9].mxu0 }
 0x2fe   : > { %v790_v61 = vpop.trf.xlu0 }
 0x2ff   : > { %4247 = vmatprep.mubr.msk.f32.mxu1 %vm806_vm1, %v790_v61 }
 0x302   : > { %v791_v62 = vpop.trf.xlu0 }
 0x303   : > { %4248 = vmatmul.mubr.msk.f32.vlgmr.msra.gmra.mrb[0].mxu1 %vm806_vm1, %v791_v62 }
 0x304   : > { %4254 = vmatprep.mubr.msk.f32.mxu1 %vm5061_vm5, %v5062_v35 }
 0x3d6   : > { %v4249_v5 = vpop.f32.mrb[0].mxu1 }
 0x3d7   : > { %v889_v6 = vmul.f32 0.35355338, %v4249_v5  ;;  %v879_v7 = vpop.f32.mrb[1].mxu1 }
 0x3d8   : > { %v888_v8 = vmul.f32 0.35355338, %v879_v7 }
 0x3d9   : > { %v891_v9 = vsel %vm470_vm2, -1e+09, %v889_v6 }
 0x3da   : > { %v896_v10 = vsel %vm892_vm3, %v891_v9, -inf  ;;  %v890_v11 = vsel %vm469_vm4, -1e+09, %v888_v8 }
 0x3db   : > { %897 = vmax.xlane.f32.xlu0 %v896_v10  ;;  %v893_v12 = vsel %vm892_vm3, %v890_v11, -inf }
 0x3dc   : > { %894 = vmax.xlane.f32.xlu1 %v893_v12 }
 0x3ed   : > { %559 = vperm.xlu1 %4668, %v541_v13  }
 0x468   : > { %v898_v14 = vpop.xlane.xlu0 %897 }
 0x469   : > { %v900_v15 = vsub.f32 %v891_v9, %v898_v14  ;;  %v895_v16 = vpop.xlane.xlu1 %894 }
 0x46a   : > { %v899_v17 = vsub.f32 %v890_v11, %v895_v16  ;;  %v547_v16 = vld [vmem:[#allocation10 + $0x38] sm:$0xff] }
 0x46b   : > { %v903_v19 = vmul.f32 1.442695, %v900_v15  ;;  %v546_v15 = vld [vmem:[#allocation10 + $0x30] sm:$0xff] }
 0x46c   : > { %v901_v20 = vmul.f32 1.442695, %v899_v17 }
 0x46d   : > { %4669 = vpow2.f32 %v903_v19  ;;  %v560_v36 = vpop.permute.xlu1 %559 }
 0x46e   : > { %4671 = vpow2.f32 %v901_v20  ;;  %v721_v37 = vadd.f32 %v5491_v51, %v560_v36 }
 0x477   : > { %v4670_v21 = vpop.eup %4669 }
 0x478   : > { %v4672_v22 = vpop.eup %4671  ;;  %v908_v24 = vsel %vm892_vm3, %v4670_v21, 0.0 }
 0x479   : > { %909 = vadd.xlane.f32.xlu0 %v908_v24  ;;  %v905_v25 = vsel %vm892_vm3, %v4672_v22, 0.0 }
 0x47a   : > { %906 = vadd.xlane.f32.xlu1 %v905_v25 }
 0x48b   : > { %579 = vperm.xlu1 %4668, %v545_v26  }
 0x48f   : > { %594 = vperm.xlu0 %4667, %v548_v28  }
 0x4ad   : > { %996 = vxpose.xlu0.b32.start.end [1/1] (short) (narrow) %v721_v37, 16 }
 0x506   : > { %v910_v38 = vpop.xlane.xlu0 %909 }
 0x507   : > { %4673 = vrcp.f32 %v910_v38  ;;  %v907_v39 = vpop.xlane.xlu1 %906 }
 0x508   : > { %4675 = vrcp.f32 %v907_v39 }
 0x50b   : > { %v580_v44 = vpop.permute.xlu1 %579 }
 0x50c   : > { %v741_v47 = vadd.f32 %v5497_v57, %v580_v44 }
 0x50e   : > { %v595_v48 = vpop.permute.xlu0 %594 }
 0x50f   : > { %v756_v49 = vadd.f32 %v755_v31, %v595_v48 }
 0x511   : > { %v4674_v40 = vpop.eup %4673 }
 0x512   : > { %v4676_v41 = vpop.eup %4675  ;;  %v916_v42 = vmul.f32 %v4674_v40, %v4670_v21 }
 0x513   : > { %v915_v43 = vmul.f32 %v4676_v41, %v4672_v22 }
 0x515   : > { %v4460_v46 = vpack.c.bf16 %v916_v42, %v915_v43 }
 0x517   : > { %4462 = vmatpush3.bf16.xpose.msk.msra.mxu1 %vm5534_vm6, %v4460_v46 }
 0x518   : > { %4257 = vmatprep.subr.mxu1 %v741_v47 }
 0x51e   : > { %4255 = vmatmul.mubr.msk.f32.vlgmr.msra.gmra.mrb[2].mxu1 %vm892_vm3, %v756_v49 }
 0x51f   : > { %4258 = vmatpush3.msra.mxu1 %v741_v47 }
 0x520   : > { %4463 = vmatprep.subr.bf16.mxu1 %v5060_v34 }
 0x52d   : > { %v1012_v50 = vpop.trf.xlu0 }
 0x52e   : > { %4259 = vmatprep.mubr.msk.f32.mxu1 %vm806_vm1, %v1012_v50 }
 0x531   : > { %v1013_v51 = vpop.trf.xlu0 }
 0x532   : > { %4260 = vmatmul.mubr.msk.f32.vlgmr.msra.gmra.mrb[4].mxu1 %vm806_vm1, %v1013_v51 }
 0x533   : > { %4266 = vmatprep.mubr.msk.f32.mxu1 %vm5061_vm5, %v5062_v35 }
 0x5f1   : > { %v5547_v52 = vpop.f32.mrb[2].mxu1 }
 0x5f2   : > { %v4256_v53 = vpop.f32.mrb[3].mxu1 }
 0x605   : > { %v4261_v54 = vpop.f32.mrb[4].mxu1 }
 0x606   : > { %v1110_v57 = vmul.f32 0.35355338, %v4261_v54  ;;  %v1100_v58 = vpop.f32.mrb[5].mxu1 }
 0x607   : > { %v1109_v59 = vmul.f32 0.35355338, %v1100_v58 }
 0x608   : > { %v1112_v60 = vsel %vm470_vm2, -1e+09, %v1110_v57 }
 0x609   : > { %v1116_v61 = vsel %vm892_vm3, %v1112_v60, -inf  ;;  %v1111_v62 = vsel %vm469_vm4, -1e+09, %v1109_v59 }
 0x60a   : > { %1117 = vmax.xlane.f32.xlu0 %v1116_v61  ;;  %v1113_v63 = vsel %vm892_vm3, %v1111_v62, -inf }
 0x60b   : > { %1114 = vmax.xlane.f32.xlu1 %v1113_v63 }
 0x61c   : > { %564 = vperm.xlu1 %4668, %v542_v0  }
 0x620   : > { %599 = vperm.xlu0 %4667, %v549_v1   ;;  %569 = vperm.xlu1 %4668, %v543_v2  }
 0x697   : > { %v1118_v5 = vpop.xlane.xlu0 %1117 }
 0x698   : > { %v1120_v6 = vsub.f32 %v1112_v60, %v1118_v5  ;;  %v1115_v7 = vpop.xlane.xlu1 %1114 }
 0x699   : > { %v1119_v8 = vsub.f32 %v1111_v62, %v1115_v7 }
 0x69a   : > { %v1123_v9 = vmul.f32 1.442695, %v1120_v6 }
 0x69b   : > { %v1121_v10 = vmul.f32 1.442695, %v1119_v8 }
 0x69c   : > { %4677 = vpow2.f32 %v1123_v9  ;;  %v565_v17 = vpop.permute.xlu1 %564 }
 0x69d   : > { %4679 = vpow2.f32 %v1121_v10  ;;  %v726_v19 = vadd.f32 %v5495_v56, %v565_v17 }
 0x69f   : > { %v600_v22 = vpop.permute.xlu0 %599 }
 0x6a0   : > { %v570_v20 = vpop.permute.xlu1 %569 }
 0x6a1   : > { %v731_v21 = vadd.f32 %v5493_v55, %v570_v20  ;;  %v761_v55 = vadd.f32 %v5525_v30, %v600_v22  ;;  %v539_v30 = vld [vmem:[#allocation8 + $0x58] sm:$0xff] }
 0x6a6   : > { %v4678_v11 = vpop.eup %4677 }
 0x6a7   : > { %v4680_v12 = vpop.eup %4679  ;;  %v1128_v13 = vsel %vm892_vm3, %v4678_v11, 0.0 }
 0x6a8   : > { %1129 = vadd.xlane.f32.xlu0 %v1128_v13  ;;  %v1125_v14 = vsel %vm892_vm3, %v4680_v12, 0.0 }
 0x6a9   : > { %1126 = vadd.xlane.f32.xlu1 %v1125_v14 }
 0x6ba   : > { %584 = vperm.xlu1 %4668, %v546_v15  }
 0x6be   : > { %589 = vperm.xlu0 %4667, %v547_v16  }
 0x6dc   : > { %1216 = vxpose.xlu0.b32.start.end [1/1] (short) (narrow) %v726_v19, 16 }
 0x6e3   : > { %1436 = vxpose.xlu1.b32.start.end [1/1] (short) (narrow) %v731_v21, 16 }
 0x735   : > { %v1130_v24 = vpop.xlane.xlu0 %1129 }
 0x736   : > { %4681 = vrcp.f32 %v1130_v24  ;;  %v1127_v25 = vpop.xlane.xlu1 %1126 }
 0x737   : > { %4683 = vrcp.f32 %v1127_v25 }
 0x73a   : > { %v585_v37 = vpop.permute.xlu1 %584 }
 0x73b   : > { %v746_v39 = vadd.f32 %v5523_v29, %v585_v37  ;;  %v1662_v37 = vld [vmem:[#allocation13 + $0x48] sm:$0xff] }
 0x73d   : > { %v590_v56 = vpop.permute.xlu0 %589 }
 0x73e   : > { %v751_v40 = vadd.f32 %v5521_v27, %v590_v56  ;;  %v538_v27 = vld [vmem:[#allocation8 + $0x50] sm:$0xff] }
 0x73f   : > { %4242 = vmatprep.mubr.msk.f32.mxu0 %vm612_vm0, %v538_v27  ;;  %v1663_v56 = vld [vmem:[#allocation13 + $0x50] sm:$0xff]  ;;  %v1819_v27 = vld [vmem:[#allocation13 + $0x98] sm:$0xff] }
 0x740   : > { %v4682_v26 = vpop.eup %4681  ;;  %4243 = vmatmul.mubr.msk.f32.gmra.mrb[10].mxu0 %vm612_vm0, %v539_v30  ;;  %v1818_v30 = vld [vmem:[#allocation13 + $0x90] sm:$0xff] }
 0x741   : > { %v4684_v28 = vpop.eup %4683  ;;  %v1136_v31 = vmul.f32 %v4682_v26, %v4678_v11  ;;  %4278 = vmatprep.mubr.msk.f32.mxu0 %vm5061_vm5, %v5062_v35  ;;  %v550_v26 = vld [vmem:[#allocation10 + $0x50] sm:$0xff] }
 0x742   : > { %v1135_v36 = vmul.f32 %v4684_v28, %v4680_v12 }
 0x744   : > { %v4464_v38 = vpack.c.bf16 %v1136_v31, %v1135_v36  ;;  %v1661_v31 = vld [vmem:[#allocation13 + $0x40] sm:$0xff] }
 0x746   : > { %4466 = vmatpush3.bf16.xpose.msk.msra.mxu1 %vm5534_vm6, %v4464_v38  ;;  %v551_v38 = vld [vmem:[#allocation10 + $0x58] sm:$0xff] }
 0x747   : > { %4269 = vmatprep.subr.mxu1 %v746_v39 }
 0x74d   : > { %4267 = vmatmul.mubr.msk.f32.vlgmr.msra.gmra.mrb[6].mxu1 %vm892_vm3, %v761_v55  ;;  %v1788_v55 = vld [vmem:[#allocation13 + $0x68] sm:$0xff] }
 0x74e   : > { %4270 = vmatpush3.msra.mxu1 %v746_v39  ;;  %v1664_v39 = vld [vmem:[#allocation13 + $0x58] sm:$0xff] }
 0x74f   : > { %4281 = vmatprep.subr.mxu1 %v751_v40 }
 0x75c   : > { %v1232_v41 = vpop.trf.xlu0 }
 0x75d   : > { %4271 = vmatprep.mubr.msk.f32.mxu1 %vm806_vm1, %v1232_v41  ;;  %v1817_v41 = vld [vmem:[#allocation13 + $0x88] sm:$0xff] }
 0x760   : > { %v1233_v42 = vpop.trf.xlu0 }
 0x761   : > { %4272 = vmatmul.mubr.msk.f32.vlgmr.msra.gmra.mrb[8].mxu1 %vm806_vm1, %v1233_v42  ;;  %v1816_v42 = vld [vmem:[#allocation13 + $0x80] sm:$0xff] }
 0x762   : > { %4282 = vmatpush3.msra.mxu1 %v751_v40  ;;  %v1787_v40 = vld [vmem:[#allocation13 + $0x60] sm:$0xff] }
 0x763   : > { %v1452_v29 = vpop.trf.xlu1  ;;  %4471 = vmatprep.subr.bf16.mxu1 %v5060_v34 }
 0x764   : > { %4283 = vmatprep.mubr.msk.f32.mxu1 %vm806_vm1, %v1452_v29  ;;  %v1790_v29 = vld [vmem:[#allocation13 + $0x78] sm:$0xff] }
 0x767   : > { %v1453_v43 = vpop.trf.xlu1 }
 0x768   : > { %4284 = vmatmul.mubr.msk.f32.vlgmr.msra.gmra.mrb[10].mxu1 %vm806_vm1, %v1453_v43  ;;  %v1789_v43 = vld [vmem:[#allocation13 + $0x70] sm:$0xff] }
 0x769   : > { %4290 = vmatprep.mubr.msk.f32.mxu1 %vm5061_vm5, %v5062_v35 }
 0x813   : > { %v5607_v28 = vpop.f32.mrb[10].mxu0 }
 0x814   : > { %v5609_v36 = vpop.f32.mrb[11].mxu0 }
 0x820   : > { %v1212_v44 = vpop.f32.mrb[6].mxu1 }
 0x821   : > { %v5577_v46 = vpack.c.bf16 %v1212_v44, %v5547_v52  ;;  %v4268_v47 = vpop.f32.mrb[7].mxu1  ;;  %v1851_v44 = vld [vmem:[#allocation13 + $0xa8] sm:$0xff] }
 0x822   : > { %v1850_v47 = vld [vmem:[#allocation13 + $0xa0] sm:$0xff] }
 0x834   : > { %v4273_v48 = vpop.f32.mrb[8].mxu1 }
 0x835   : > { %v1330_v49 = vmul.f32 0.35355338, %v4273_v48  ;;  %v1320_v50 = vpop.f32.mrb[9].mxu1  ;;  %v1853_v48 = vld [vmem:[#allocation13 + $0xb8] sm:$0xff] }
 0x836   : > { %v1329_v51 = vmul.f32 0.35355338, %v1320_v50  ;;  %v1982_v50 = vld [vmem:[#allocation13 + $0xc8] sm:$0xff] }
 0x837   : > { %v1332_v53 = vsel %vm470_vm2, -1e+09, %v1330_v49  ;;  %v1852_v49 = vld [vmem:[#allocation13 + $0xb0] sm:$0xff] }
 0x838   : > { %v1336_v54 = vsel %vm892_vm3, %v1332_v53, -inf  ;;  %v1331_v57 = vsel %vm469_vm4, -1e+09, %v1329_v51  ;;  %v1981_v51 = vld [vmem:[#allocation13 + $0xc0] sm:$0xff] }
 0x839   : > { %1337 = vmax.xlane.f32.xlu1 %v1336_v54  ;;  %v1333_v58 = vsel %vm892_vm3, %v1331_v57, -inf  ;;  %v1983_v54 = vld [vmem:[#allocation13 + $0xd0] sm:$0xff] }
 0x83a   : > { %1334 = vmax.xlane.f32.xlu0 %v1333_v58  ;;  %v2107_v58 = vld [vmem:[#allocation13 + $0xe0] sm:$0xff] }
 0x83b   : > { %v4285_v59 = vpop.f32.mrb[10].mxu1 }
 0x83c   : > { %v1540_v52 = vpop.f32.mrb[11].mxu1  ;;  %v1550_v60 = vmul.f32 0.35355338, %v4285_v59  ;;  %v2137_v59 = vld [vmem:[#allocation13 + $0x108] sm:$0xff] }
 0x83d   : > { %v1549_v61 = vmul.f32 0.35355338, %v1540_v52  ;;  %v2136_v52 = vld [vmem:[#allocation13 + $0x100] sm:$0xff] }
 0x83e   : > { %v1552_v0 = vsel %vm470_vm2, -1e+09, %v1550_v60  ;;  %v2110_v60 = vld [vmem:[#allocation13 + $0xf8] sm:$0xff] }
 0x83f   : > { %v1551_v62 = vsel %vm469_vm4, -1e+09, %v1549_v61  ;;  %v1556_v1 = vsel %vm892_vm3, %v1552_v0, -inf  ;;  %v2109_v61 = vld [vmem:[#allocation13 + $0xf0] sm:$0xff] }
 0x840   : > { %v1553_v63 = vsel %vm892_vm3, %v1551_v62, -inf }
 0x841   : > { %1554 = vmax.xlane.f32.xlu0 %v1553_v63  ;;  %v2138_v63 = vld [vmem:[#allocation13 + $0x110] sm:$0xff] }
 0x845   : > { %1557 = vmax.xlane.f32.xlu0 %v1556_v1  ;;  %v2178_v1 = vld [vmem:[#allocation10 + $0x60] sm:$0xff] }
 0x8c6   : > { %v1338_v2 = vpop.xlane.xlu1 %1337 }
 0x8c7   : > { %v1340_v5 = vsub.f32 %v1332_v53, %v1338_v2  ;;  %v1335_v6 = vpop.xlane.xlu0 %1334  ;;  %v1984_v53 = vld [vmem:[#allocation13 + $0xd8] sm:$0xff] }
 0x8c8   : > { %v1339_v7 = vsub.f32 %v1331_v57, %v1335_v6  ;;  %v2108_v57 = vld [vmem:[#allocation13 + $0xe8] sm:$0xff] }
 0x8c9   : > { %v1343_v8 = vmul.f32 1.442695, %v1340_v5 }
 0x8ca   : > { %v1341_v9 = vmul.f32 1.442695, %v1339_v7 }
 0x8cb   : > { %4685 = vpow2.f32 %v1343_v8 }
 0x8cc   : > { %4687 = vpow2.f32 %v1341_v9 }
 0x8ce   : > { %v1555_v10 = vpop.xlane.xlu0 %1554 }
 0x8cf   : > { %v1559_v11 = vsub.f32 %v1551_v62, %v1555_v10  ;;  %v2139_v62 = vld [vmem:[#allocation13 + $0x118] sm:$0xff] }
 0x8d1   : > { %v1561_v12 = vmul.f32 1.442695, %v1559_v11 }
 0x8d2   : > { %v1558_v13 = vpop.xlane.xlu0 %1557 }
 0x8d3   : > { %4689 = vpow2.f32 %v1561_v12  ;;  %v1560_v14 = vsub.f32 %v1552_v0, %v1558_v13  ;;  %v2182_v0 = vld [vmem:[#allocation10 + $0x80] sm:$0xff] }
 0x8d5   : > { %v5591_v15 = vpop.eup %4685  ;;  %v1563_v16 = vmul.f32 1.442695, %v1560_v14 }
 0x8d6   : > { %v5593_v17 = vpop.eup %4687  ;;  %v1348_v19 = vsel %vm892_vm3, %v5591_v15, 0.0 }
 0x8d7   : > { %4691 = vpow2.f32 %v1563_v16  ;;  %1349 = vadd.xlane.f32.xlu0 %v1348_v19  ;;  %v1345_v20 = vsel %vm892_vm3, %v5593_v17, 0.0 }
 0x8d8   : > { %1346 = vadd.xlane.f32.xlu1 %v1345_v20 }
 0x8dd   : > { %v5599_v21 = vpop.eup %4689 }
 0x8de   : > { %v1565_v22 = vsel %vm892_vm3, %v5599_v21, 0.0 }
 0x8df   : > { %1566 = vadd.xlane.f32.xlu1 %v1565_v22 }
 0x8e1   : > { %v5603_v24 = vpop.eup %4691 }
 0x8e2   : > { %v1568_v25 = vsel %vm892_vm3, %v5603_v24, 0.0 }
 0x8e3   : > { %1569 = vadd.xlane.f32.xlu0 %v1568_v25 }
 0x8f0   : > { %604 = vperm.xlu1 %4668, %v550_v26   ;;  %v1656_v26 = vld [vmem:[#allocation11] sm:$0xff] }
 0x8f4   : > { %1667 = vperm.xlu1 %4668, %v1661_v31  }
 0x8f8   : > { %1672 = vperm.xlu1 %4668, %v1662_v37  }
 0x8f9   : > { %609 = vperm.xlu0 %4667, %v551_v38   ;;  %v1658_v38 = vld [vmem:[#allocation11 + $0x10] sm:$0xff] }
 0x8fc   : > { %1682 = vperm.xlu1 %4668, %v1664_v39   ;;  %v1659_v39 = vld [vmem:[#allocation11 + $0x18] sm:$0xff] }
 0x8fd   : > { %1677 = vperm.xlu0 %4667, %v1663_v56  }
 0x900   : > { %1798 = vperm.xlu1 %4668, %v1788_v55  }
 0x901   : > { %1793 = vperm.xlu0 %4667, %v1787_v40  }
 0x904   : > { %1827 = vperm.xlu1 %4668, %v1817_v41  }
 0x905   : > { %1822 = vperm.xlu0 %4667, %v1816_v42  }
 0x908   : > { %1808 = vperm.xlu1 %4668, %v1790_v29  }
 0x909   : > { %1803 = vperm.xlu0 %4667, %v1789_v43  }
 0x90c   : > { %1837 = vperm.xlu1 %4668, %v1819_v27  }
 0x90d   : > { %1832 = vperm.xlu0 %4667, %v1818_v30  }
 0x910   : > { %1861 = vperm.xlu1 %4668, %v1851_v44  }
 0x911   : > { %1856 = vperm.xlu0 %4667, %v1850_v47  }
 0x914   : > { %1871 = vperm.xlu1 %4668, %v1853_v48  }
 0x915   : > { %1866 = vperm.xlu0 %4667, %v1852_v49  }
 0x918   : > { %1992 = vperm.xlu1 %4668, %v1982_v50  }
 0x919   : > { %1987 = vperm.xlu0 %4667, %v1981_v51  }
 0x91c   : > { %2002 = vperm.xlu1 %4668, %v1984_v53  }
 0x91d   : > { %1997 = vperm.xlu0 %4667, %v1983_v54  }
 0x920   : > { %2118 = vperm.xlu1 %4668, %v2108_v57  }
 0x921   : > { %2113 = vperm.xlu0 %4667, %v2107_v58  }
 0x924   : > { %2147 = vperm.xlu1 %4668, %v2137_v59  }
 0x925   : > { %2142 = vperm.xlu0 %4667, %v2136_v52  }
 0x928   : > { %2128 = vperm.xlu1 %4668, %v2110_v60  }
 0x929   : > { %2123 = vperm.xlu0 %4667, %v2109_v61  }
 0x92c   : > { %2157 = vperm.xlu1 %4668, %v2139_v62  }
 0x92d   : > { %2152 = vperm.xlu0 %4667, %v2138_v63  }
 0x930   : > { %2212 = vperm.xlu1 %4668, %v2182_v0  }
 0x931   : > { %2192 = vperm.xlu0 %4667, %v2178_v1  }
 0x964   : > { %v1350_v2 = vpop.xlane.xlu0 %1349 }
 0x965   : > { %4693 = vrcp.f32 %v1350_v2  ;;  %v1347_v5 = vpop.xlane.xlu1 %1346 }
 0x966   : > { %4695 = vrcp.f32 %v1347_v5 }
 0x96c   : > { %v1567_v6 = vpop.xlane.xlu1 %1566 }
 0x96d   : > { %4697 = vrcp.f32 %v1567_v6 }
 0x96f   : > { %v4694_v7 = vpop.eup %4693 }
 0x970   : > { %v4696_v8 = vpop.eup %4695  ;;  %v1356_v9 = vmul.f32 %v4694_v7, %v5591_v15  ;;  %v1570_v10 = vpop.xlane.xlu0 %1569 }
 0x971   : > { %v1355_v11 = vmul.f32 %v4696_v8, %v5593_v17  ;;  %4699 = vrcp.f32 %v1570_v10  ;;  %v605_v13 = vpop.permute.xlu1 %604  ;;  %v1976_v10 = vld [vmem:[#allocation11 + $0x40] sm:$0xff] }
 0x972   : > { %v766_v16 = vadd.f32 %v5609_v36, %v605_v13 }
 0x973   : > { %v4468_v12 = vpack.c.bf16 %v1356_v9, %v1355_v11  ;;  %v1847_v9 = vld [vmem:[#allocation11 + $0x30] sm:$0xff] }
 0x975   : > { %4470 = vmatpush3.bf16.xpose.msk.msra.mxu0 %vm5534_vm6, %v4468_v12  ;;  %v1668_v56 = vpop.permute.xlu1 %1667 }
 0x976   : > { %4476 = vmatprep.subr.bf16.mxu0 %v5577_v46 }
 0x977   : > { %v4698_v14 = vpop.eup %4697 }
 0x978   : > { %v1575_v20 = vmul.f32 %v4698_v14, %v5599_v21  ;;  %v610_v17 = vpop.permute.xlu0 %609 }
 0x979   : > { %v771_v25 = vadd.f32 %v5607_v28, %v610_v17  ;;  %v1845_v28 = vld [vmem:[#allocation11 + $0x20] sm:$0xff]  ;;  %v1673_v55 = vpop.permute.xlu1 %1672 }
 0x97b   : > { %v4700_v19 = vpop.eup %4699 }
 0x97c   : > { %v1576_v22 = vmul.f32 %v4700_v19, %v5603_v24  ;;  %4279 = vmatmul.mubr.msk.f32.vlgmr.msra.gmra.mrb[12].mxu0 %vm892_vm3, %v766_v16  ;;  %v1678_v41 = vpop.permute.xlu0 %1677 }
 0x97d   : > { %4478 = vmatpush3.bf16.msra.mxu0 %v5577_v46  ;;  %4301 = vmatprep.mubr.msk.f32.mxu0 %vm612_vm0, %v1656_v26  ;;  %v1657_v46 = vld [vmem:[#allocation11 + $0x8] sm:$0xff]  ;;  %v1683_v40 = vpop.permute.xlu1 %1682 }
 0x97e   : > { %v4472_v15 = vpack.c.bf16 %v1576_v22, %v1575_v20 }
 0x980   : > { %4474 = vmatpush3.bf16.xpose.msk.msra.mxu1 %vm5534_vm6, %v4472_v15  ;;  %v1794_v29 = vpop.permute.xlu0 %1793 }
 0x981   : > { %v1799_v42 = vpop.permute.xlu1 %1798 }
 0x984   : > { %v1823_v27 = vpop.permute.xlu0 %1822 }
 0x985   : > { %v1828_v43 = vpop.permute.xlu1 %1827 }
 0x987   : > { %4291 = vmatmul.mubr.msk.f32.vlgmr.msra.gmra.mrb[12].mxu1 %vm892_vm3, %v771_v25 }
 0x988   : > { %4315 = vmatprep.mubr.msk.f32.mxu1 %vm612_vm0, %v1845_v28  ;;  %v1804_v54 = vpop.permute.xlu0 %1803  ;;  %v1979_v28 = vld [vmem:[#allocation11 + $0x58] sm:$0xff] }
 0x989   : > { %v1809_v50 = vpop.permute.xlu1 %1808 }
 0x98c   : > { %v1833_v5 = vpop.permute.xlu0 %1832 }
 0x98d   : > { %v1838_v0 = vpop.permute.xlu1 %1837 }
 0x990   : > { %v1857_v12 = vpop.permute.xlu0 %1856 }
 0x991   : > { %v1862_v11 = vpop.permute.xlu1 %1861 }
 0x994   : > { %v1867_v25 = vpop.permute.xlu0 %1866 }
 0x995   : > { %v1872_v22 = vpop.permute.xlu1 %1871 }
 0xa4f   : > { %v1432_v31 = vpop.f32.mrb[12].mxu0 }
 0xa50   : > { %v4280_v21 = vpop.f32.mrb[13].mxu0 }
 0xa5a   : > { %v1652_v36 = vpop.f32.mrb[12].mxu1 }
 0xa5b   : > { %v4479_v24 = vpack.c.bf16 %v1652_v36, %v1432_v31  ;;  %v4292_v37 = vpop.f32.mrb[13].mxu1 }
 0xa5d   : > { %4480 = vmatprep.subr.bf16.mxu0 %v4479_v24 }
 0xa5e   : > { %4482 = vmatpush3.bf16.msra.mxu0 %v4479_v24 }
 0xa61   : > { %4302 = vmatmul.mubr.msk.f32.vlgmr.msra.gmra.mrb[14].mxu0 %vm612_vm0, %v1657_v46 }
 0xa62   : > { %4304 = vmatprep.mubr.msk.f32.mxu0 %vm612_vm0, %v1658_v38  ;;  %v1977_v38 = vld [vmem:[#allocation11 + $0x48] sm:$0xff] }
 0xa65   : > { %4305 = vmatmul.mubr.msk.f32.gmra.mrb[16].mxu0 %vm612_vm0, %v1659_v39  ;;  %v1978_v39 = vld [vmem:[#allocation11 + $0x50] sm:$0xff] }
 0xa66   : > { %4329 = vmatprep.mubr.msk.f32.mxu0 %vm612_vm0, %v1976_v10  ;;  %v2167_v10 = vld [vmem:[#allocation8 + $0x70] sm:$0xff] }
 0xb34   : > { %v4303_v30 = vpop.f32.mrb[14].mxu0 }
 0xb35   : > { %v1769_v44 = vadd.f32 %v4303_v30, %v1673_v55  ;;  %v1763_v47 = vpop.f32.mrb[15].mxu0  ;;  %v1993_v55 = vpop.permute.xlu1 %1992 }
 0xb36   : > { %v1764_v48 = vadd.f32 %v1763_v47, %v1668_v56  ;;  %v2165_v56 = vld [vmem:[#allocation8 + $0x60] sm:$0xff] }
 0xb37   : > { %v5631_v49 = vadd.f32 %v1769_v44, %v5476_v23 }
 0xb38   : > { %v5634_v51 = vadd.f32 %v1764_v48, %v5472_v18  ;;  %v4306_v53 = vpop.f32.mrb[16].mxu0 }
 0xb39   : > { %v1812_v57 = vmul.f32 %v1799_v42, %v5631_v49  ;;  %v1779_v58 = vadd.f32 %v4306_v53, %v1683_v40  ;;  %v1773_v59 = vpop.f32.mrb[17].mxu0  ;;  %v1988_v40 = vpop.permute.xlu0 %1987 }
 0xb3a   : > { %v1811_v52 = vmul.f32 %v1794_v29, %v5634_v51  ;;  %v1774_v60 = vadd.f32 %v1773_v59, %v1678_v41  ;;  %v2003_v41 = vpop.permute.xlu1 %2002 }
 0xb3b   : > { %v5639_v61 = vadd.f32 %v1779_v58, %v5480_v32  ;;  %v1841_v62 = vadd.f32 %v1828_v43, %v1812_v57  ;;  %v1846_v32 = vld [vmem:[#allocation11 + $0x28] sm:$0xff] }
 0xb3c   : > { %v5642_v23 = vadd.f32 %v1774_v60, %v5482_v33  ;;  %v1840_v63 = vadd.f32 %v1823_v27, %v1811_v52  ;;  %v1848_v33 = vld [vmem:[#allocation11 + $0x38] sm:$0xff] }
 0xb3d   : > { %v1814_v18 = vmul.f32 %v1809_v50, %v5639_v61  ;;  %v1998_v42 = vpop.permute.xlu0 %1997 }
 0xb3e   : > { %v1813_v1 = vmul.f32 %v1804_v54, %v5642_v23  ;;  %v4483_v2 = vpack.c.bf16 %v1841_v62, %v1840_v63  ;;  %v2119_v29 = vpop.permute.xlu1 %2118 }
 0xb3f   : > { %v1843_v6 = vadd.f32 %v1838_v0, %v1814_v18 }
 0xb40   : > { %4484 = vmatprep.subr.bf16.mxu1 %v4483_v2  ;;  %v1842_v7 = vadd.f32 %v1833_v5, %v1813_v1 }
 0xb41   : > { %4486 = vmatpush3.bf16.msra.mxu1 %v4483_v2  ;;  %v2114_v43 = vpop.permute.xlu0 %2113 }
 0xb42   : > { %v4487_v8 = vpack.c.bf16 %v1843_v6, %v1842_v7  ;;  %v2148_v27 = vpop.permute.xlu1 %2147 }
 0xb44   : > { %4488 = vmatprep.subr.bf16.mxu1 %v4487_v8 }
 0xb45   : > { %4490 = vmatpush3.bf16.msra.mxu1 %v4487_v8  ;;  %v2143_v30 = vpop.permute.xlu0 %2142 }
 0xb46   : > { %v2129_v54 = vpop.permute.xlu1 %2128 }
 0xb48   : > { %4316 = vmatmul.mubr.msk.f32.vlgmr.msra.gmra.mrb[14].mxu1 %vm612_vm0, %v1846_v32 }
 0xb49   : > { %4318 = vmatprep.mubr.msk.f32.mxu1 %vm612_vm0, %v1847_v9  ;;  %v2124_v59 = vpop.permute.xlu0 %2123 }
 0xb4a   : > { %v2158_v5 = vpop.permute.xlu1 %2157 }
 0xb4c   : > { %4319 = vmatmul.mubr.msk.f32.gmra.mrb[16].mxu1 %vm612_vm0, %v1848_v33 }
 0xb4d   : > { %4343 = vmatprep.mubr.msk.f32.mxu1 %vm612_vm0, %v2165_v56  ;;  %v2153_v8 = vpop.permute.xlu0 %2152 }
 0xc1b   : > { %v4317_v13 = vpop.f32.mrb[14].mxu1 }
 0xc1c   : > { %v1958_v14 = vadd.f32 %v4317_v13, %v1862_v11  ;;  %v1952_v16 = vpop.f32.mrb[15].mxu1  ;;  %v2169_v11 = vld [vmem:[#allocation8 + $0x80] sm:$0xff] }
 0xc1d   : > { %v1953_v19 = vadd.f32 %v1952_v16, %v1857_v12  ;;  %v2170_v12 = vld [vmem:[#allocation8 + $0x88] sm:$0xff] }
 0xc1e   : > { %v1972_v20 = vmax.f32 %v1958_v14, 0.0  ;;  %v2193_v14 = vpop.permute.xlu0 %2192 }
 0xc1f   : > { %v1971_v15 = vmax.f32 %v1953_v19, 0.0  ;;  %v4320_v17 = vpop.f32.mrb[16].mxu1 }
 0xc20   : > { %v1968_v26 = vadd.f32 %v4320_v17, %v1872_v22  ;;  %v1962_v31 = vpop.f32.mrb[17].mxu1  ;;  %v2213_v17 = vpop.permute.xlu1 %2212 }
 0xc21   : > { %v4491_v21 = vpack.c.bf16 %v1972_v20, %v1971_v15  ;;  %v1963_v36 = vadd.f32 %v1962_v31, %v1867_v25  ;;  %v2172_v31 = vld [vmem:[#allocation8 + $0x98] sm:$0xff] }
 0xc22   : > { %v1974_v24 = vmax.f32 %v1968_v26, 0.0  ;;  %v2171_v26 = vld [vmem:[#allocation8 + $0x90] sm:$0xff] }
 0xc23   : > { %v1973_v37 = vmax.f32 %v1963_v36, 0.0  ;;  %4492 = vmatprep.subr.bf16.mxu0 %v4491_v21 }
 0xc24   : > { %4494 = vmatpush3.bf16.msra.mxu0 %v4491_v21  ;;  %v2173_v21 = vld [vmem:[#allocation8 + $0xa0] sm:$0xff] }
 0xc25   : > { %v4495_v46 = vpack.c.bf16 %v1974_v24, %v1973_v37  ;;  %v2174_v24 = vld [vmem:[#allocation8 + $0xa8] sm:$0xff] }
 0xc27   : > { %4496 = vmatprep.subr.bf16.mxu0 %v4495_v46 }
 0xc28   : > { %4498 = vmatpush3.bf16.msra.mxu0 %v4495_v46 }
 0xc2b   : > { %4330 = vmatmul.mubr.msk.f32.vlgmr.msra.gmra.mrb[18].mxu0 %vm612_vm0, %v1977_v38 }
 0xc2c   : > { %4332 = vmatprep.mubr.msk.f32.mxu0 %vm612_vm0, %v1978_v39 }
 0xc2f   : > { %4333 = vmatmul.mubr.msk.f32.gmra.mrb[20].mxu0 %vm612_vm0, %v1979_v28 }
 0xcfe   : > { %v4331_v44 = vpop.f32.mrb[18].mxu0 }
 0xcff   : > { %v2089_v47 = vadd.f32 %v4331_v44, %v1993_v55  ;;  %v2083_v48 = vpop.f32.mrb[19].mxu0  ;;  %v2186_v44 = vld [vmem:[#allocation10 + $0xa0] sm:$0xff] }
 0xd00   : > { %v2084_v50 = vadd.f32 %v2083_v48, %v1988_v40 }
 0xd01   : > { %v5655_v53 = vadd.f32 %v2089_v47, %v5631_v49 }
 0xd02   : > { %v5658_v57 = vadd.f32 %v2084_v50, %v5634_v51  ;;  %v4334_v58 = vpop.f32.mrb[20].mxu0 }
 0xd03   : > { %v2132_v52 = vmul.f32 %v2119_v29, %v5655_v53  ;;  %v2099_v60 = vadd.f32 %v4334_v58, %v2003_v41  ;;  %v2093_v62 = vpop.f32.mrb[21].mxu0  ;;  %v2179_v29 = vld [vmem:[#allocation10 + $0x68] sm:$0xff] }
 0xd04   : > { %v2131_v63 = vmul.f32 %v2114_v43, %v5658_v57  ;;  %v2094_v18 = vadd.f32 %v2093_v62, %v1998_v42  ;;  %v2181_v43 = vld [vmem:[#allocation10 + $0x78] sm:$0xff] }
 0xd05   : > { %v5663_v0 = vadd.f32 %v2099_v60, %v5639_v61  ;;  %v2161_v1 = vadd.f32 %v2148_v27, %v2132_v52  ;;  %v2166_v61 = vld [vmem:[#allocation8 + $0x68] sm:$0xff]  ;;  %v2180_v27 = vld [vmem:[#allocation10 + $0x70] sm:$0xff] }
 0xd06   : > { %v5666_v49 = vadd.f32 %v2094_v18, %v5642_v23  ;;  %v2160_v2 = vadd.f32 %v2143_v30, %v2131_v63  ;;  %v2168_v23 = vld [vmem:[#allocation8 + $0x78] sm:$0xff]  ;;  %v2183_v30 = vld [vmem:[#allocation10 + $0x88] sm:$0xff] }
 0xd07   : > { %v2134_v51 = vmul.f32 %v2129_v54, %v5663_v0 }
 0xd08   : > { %v2133_v6 = vmul.f32 %v2124_v59, %v5666_v49  ;;  %v4499_v7 = vpack.c.bf16 %v2161_v1, %v2160_v2 }
 0xd09   : > { %v2163_v32 = vadd.f32 %v2158_v5, %v2134_v51  ;;  %v2185_v5 = vld [vmem:[#allocation10 + $0x98] sm:$0xff] }
 0xd0a   : > { %4500 = vmatprep.subr.bf16.mxu1 %v4499_v7  ;;  %v2162_v9 = vadd.f32 %v2153_v8, %v2133_v6  ;;  %v2184_v6 = vld [vmem:[#allocation10 + $0x90] sm:$0xff] }
 0xd0b   : > { %4502 = vmatpush3.bf16.msra.mxu1 %v4499_v7 }
 0xd0c   : > { %v4503_v33 = vpack.c.bf16 %v2163_v32, %v2162_v9 }
 0xd0e   : > { %4504 = vmatprep.subr.bf16.mxu1 %v4503_v33 }
 0xd0f   : > { %4506 = vmatpush3.bf16.msra.mxu1 %v4503_v33 }
 0xd12   : > { %4344 = vmatmul.mubr.msk.f32.vlgmr.msra.gmra.mrb[18].mxu1 %vm612_vm0, %v2166_v61 }
 0xd13   : > { %4346 = vmatprep.mubr.msk.f32.mxu1 %vm612_vm0, %v2167_v10  ;;  %v2175_v10 = vld [vmem:[#allocation8 + $0xb0] sm:$0xff] }
 0xd16   : > { %4347 = vmatmul.mubr.msk.f32.gmra.mrb[20].mxu1 %vm612_vm0, %v2168_v23  ;;  %v2176_v23 = vld [vmem:[#allocation8 + $0xb8] sm:$0xff] }
 0xd17   : > { %4349 = vmatprep.mubr.msk.f32.mxu1 %vm612_vm0, %v2169_v11 }
 0xd1a   : > { %4350 = vmatmul.mubr.msk.f32.gmra.mrb[22].mxu1 %vm612_vm0, %v2170_v12 }
 0xd1b   : > { %4352 = vmatprep.mubr.msk.f32.mxu1 %vm612_vm0, %v2171_v26 }
 0xd1e   : > { %4353 = vmatmul.mubr.msk.f32.gmra.mrb[24].mxu1 %vm612_vm0, %v2172_v31 }
 0xd1f   : > { %4355 = vmatprep.mubr.msk.f32.mxu1 %vm612_vm0, %v2173_v21 }
 0xd22   : > { %4356 = vmatmul.mubr.msk.f32.gmra.mrb[26].mxu1 %vm612_vm0, %v2174_v24 }
 0xd23   : > { %4358 = vmatprep.mubr.msk.f32.mxu1 %vm612_vm0, %v2175_v10 }
 0xd26   : > { %4359 = vmatmul.mubr.msk.f32.gmra.mrb[28].mxu1 %vm612_vm0, %v2176_v23 }
 0xde5   : > { %v5675_v13 = vpop.f32.mrb[18].mxu1 }
 0xde6   : > { %v2352_v16 = vpop.f32.mrb[19].mxu1 }
 0xde7   : > { %v2353_v19 = vadd.f32 %v2352_v16, %v2193_v14 }
 0xde9   : > { %2411 = vxpose.xlu0.b32.start.end [1/1] (short) (narrow) %v2353_v19, 16  ;;  %v5677_v20 = vpop.f32.mrb[20].mxu1 }
 0xdea   : > { %v5679_v22 = vpop.f32.mrb[21].mxu1 }
 0xded   : > { %v5681_v15 = vpop.f32.mrb[22].mxu1 }
 0xdee   : > { %v2372_v25 = vpop.f32.mrb[23].mxu1 }
 0xdef   : > { %v2373_v36 = vadd.f32 %v2372_v25, %v2213_v17 }
 0xdf1   : > { %4361 = vmatprep.subr.mxu0 %v2373_v36  ;;  %v4354_v47 = vpop.f32.mrb[24].mxu1 }
 0xdf2   : > { %4362 = vmatpush3.msra.mxu0 %v2373_v36  ;;  %v2382_v48 = vpop.f32.mrb[25].mxu1 }
 0xdf3   : > { %4507 = vmatprep.subr.bf16.mxu0 %v5060_v34 }
 0xdf5   : > { %v5698_v50 = vpop.f32.mrb[26].mxu1 }
 0xdf6   : > { %v2392_v54 = vpop.f32.mrb[27].mxu1 }
 0xe69   : > { %v2427_v37 = vpop.trf.xlu0 }
 0xe6a   : > { %4363 = vmatprep.mubr.msk.f32.mxu0 %vm806_vm1, %v2427_v37 }
 0xe6d   : > { %v2428_v46 = vpop.trf.xlu0 }
 0xe6e   : > { %4364 = vmatmul.mubr.msk.f32.vlgmr.msra.gmra.mrb[22].mxu0 %vm806_vm1, %v2428_v46 }
 0xe6f   : > { %4370 = vmatprep.mubr.msk.f32.mxu0 %vm5061_vm5, %v5062_v35 }
 0xf41   : > { %v4365_v38 = vpop.f32.mrb[22].mxu0 }
 0xf42   : > { %v2525_v39 = vmul.f32 0.35355338, %v4365_v38  ;;  %v2515_v28 = vpop.f32.mrb[23].mxu0 }
 0xf43   : > { %v2524_v56 = vmul.f32 0.35355338, %v2515_v28 }
 0xf44   : > { %v2527_v55 = vsel %vm470_vm2, -1e+09, %v2525_v39 }
 0xf45   : > { %v2531_v40 = vsel %vm892_vm3, %v2527_v55, -inf  ;;  %v2526_v41 = vsel %vm469_vm4, -1e+09, %v2524_v56  ;;  %v5723_v56 = vpop.f32.mrb[28].mxu1 }
 0xf46   : > { %2532 = vmax.xlane.f32.xlu0 %v2531_v40  ;;  %v2528_v42 = vsel %vm892_vm3, %v2526_v41, -inf }
 0xf47   : > { %2529 = vmax.xlane.f32.xlu1 %v2528_v42 }
 0xf58   : > { %2197 = vperm.xlu1 %4668, %v2179_v29  }
 0xf5c   : > { %2207 = vperm.xlu0 %4667, %v2181_v43   ;;  %2202 = vperm.xlu1 %4668, %v2180_v27  }
 0xf60   : > { %2217 = vperm.xlu0 %4667, %v2183_v30   ;;  %2232 = vperm.xlu1 %4668, %v2186_v44  }
 0xfd3   : > { %v2533_v58 = vpop.xlane.xlu0 %2532 }
 0xfd4   : > { %v2535_v59 = vsub.f32 %v2527_v55, %v2533_v58  ;;  %v2530_v52 = vpop.xlane.xlu1 %2529  ;;  %v5725_v55 = vpop.f32.mrb[29].mxu1 }
 0xfd5   : > { %v2534_v60 = vsub.f32 %v2526_v41, %v2530_v52 }
 0xfd6   : > { %v2538_v62 = vmul.f32 1.442695, %v2535_v59 }
 0xfd7   : > { %v2536_v63 = vmul.f32 1.442695, %v2534_v60 }
 0xfd8   : > { %4701 = vpow2.f32 %v2538_v62  ;;  %v2198_v7 = vpop.permute.xlu1 %2197 }
 0xfd9   : > { %4703 = vpow2.f32 %v2536_v63  ;;  %v2358_v8 = vadd.f32 %v5675_v13, %v2198_v7 }
 0xfdb   : > { %v2208_v32 = vpop.permute.xlu0 %2207 }
 0xfdc   : > { %v2203_v9 = vpop.permute.xlu1 %2202  ;;  %v2368_v33 = vadd.f32 %v5677_v20, %v2208_v32 }
 0xfdd   : > { %v2363_v61 = vadd.f32 %v5679_v22, %v2203_v9 }
 0xfdf   : > { %v2218_v11 = vpop.permute.xlu0 %2217 }
 0xfe0   : > { %v2233_v12 = vpop.permute.xlu1 %2232  ;;  %v2378_v36 = vadd.f32 %v5681_v15, %v2218_v11 }
 0xfe1   : > { %v2393_v24 = vadd.f32 %v2392_v54, %v2233_v12 }
 0xfe2   : > { %v4702_v18 = vpop.eup %4701 }
 0xfe3   : > { %v4704_v1 = vpop.eup %4703  ;;  %v2543_v2 = vsel %vm892_vm3, %v4702_v18, 0.0 }
 0xfe4   : > { %2544 = vadd.xlane.f32.xlu0 %v2543_v2  ;;  %v2540_v51 = vsel %vm892_vm3, %v4704_v1, 0.0 }
 0xfe5   : > { %2541 = vadd.xlane.f32.xlu1 %v2540_v51 }
 0xff6   : > { %2227 = vperm.xlu1 %4668, %v2185_v5  }
 0xffa   : > { %2222 = vperm.xlu0 %4667, %v2184_v6  }
0x1018   : > { %2631 = vxpose.xlu0.b32.start.end [1/1] (short) (narrow) %v2358_v8, 16 }
0x101d   : > { %3071 = vxpose.xlu0.b32.start.end [1/1] (short) (narrow) %v2368_v33, 16 }
0x101f   : > { %2851 = vxpose.xlu1.b32.start.end [1/1] (short) (narrow) %v2363_v61, 16 }
0x1071   : > { %v2545_v14 = vpop.xlane.xlu0 %2544 }
0x1072   : > { %4705 = vrcp.f32 %v2545_v14  ;;  %v2542_v13 = vpop.xlane.xlu1 %2541 }
0x1073   : > { %4707 = vrcp.f32 %v2542_v13 }
0x1076   : > { %v2228_v16 = vpop.permute.xlu1 %2227 }
0x1077   : > { %v2388_v25 = vadd.f32 %v4354_v47, %v2228_v16 }
0x1079   : > { %v2223_v19 = vpop.permute.xlu0 %2222 }
0x107a   : > { %v2383_v17 = vadd.f32 %v2382_v48, %v2223_v19 }
0x107c   : > { %v4706_v20 = vpop.eup %4705  ;;  %4385 = vmatprep.subr.mxu1 %v2383_v17 }
0x107d   : > { %v4708_v22 = vpop.eup %4707  ;;  %v2551_v26 = vmul.f32 %v4706_v20, %v4702_v18  ;;  %4386 = vmatpush3.msra.mxu1 %v2383_v17 }
0x107e   : > { %v2550_v31 = vmul.f32 %v4708_v22, %v4704_v1  ;;  %4397 = vmatprep.subr.mxu1 %v2388_v25 }
0x1080   : > { %v4508_v21 = vpack.c.bf16 %v2551_v26, %v2550_v31 }
0x1082   : > { %4510 = vmatpush3.bf16.xpose.msk.msra.mxu0 %vm5534_vm6, %v4508_v21 }
0x1083   : > { %4373 = vmatprep.subr.mxu0 %v2378_v36 }
0x1089   : > { %4371 = vmatmul.mubr.msk.f32.vlgmr.msra.gmra.mrb[24].mxu0 %vm892_vm3, %v2393_v24 }
0x108a   : > { %4374 = vmatpush3.msra.mxu0 %v2378_v36 }
0x108b   : > { %4511 = vmatprep.subr.bf16.mxu0 %v5060_v34 }
0x1098   : > { %v2647_v37 = vpop.trf.xlu0 }
0x1099   : > { %4375 = vmatprep.mubr.msk.f32.mxu0 %vm806_vm1, %v2647_v37 }
0x109c   : > { %v2648_v46 = vpop.trf.xlu0 }
0x109d   : > { %4376 = vmatmul.mubr.msk.f32.vlgmr.msra.gmra.mrb[26].mxu0 %vm806_vm1, %v2648_v46 }
0x109e   : > { %4382 = vmatprep.mubr.msk.f32.mxu0 %vm5061_vm5, %v5062_v35 }
0x109f   : > { %v2867_v15 = vpop.trf.xlu1 }
0x10a0   : > { %v3087_v38 = vpop.trf.xlu0  ;;  %4387 = vmatprep.mubr.msk.f32.mxu1 %vm806_vm1, %v2867_v15 }
0x10a3   : > { %v2868_v39 = vpop.trf.xlu1 }
0x10a4   : > { %4388 = vmatmul.mubr.msk.f32.vlgmr.msra.gmra.mrb[30].mxu1 %vm806_vm1, %v2868_v39  ;;  %v3088_v28 = vpop.trf.xlu0 }
0x10a5   : > { %4398 = vmatpush3.msra.mxu1 %v2388_v25  ;;  %4399 = vmatprep.mubr.msk.f32.mxu1 %vm806_vm1, %v3087_v38 }
0x10a6   : > { %4519 = vmatprep.subr.bf16.mxu1 %v5060_v34 }
0x10a8   : > { %4400 = vmatmul.mubr.msk.f32.vlgmr.msra.gmra.mrb[32].mxu1 %vm806_vm1, %v3088_v28 }
0x10a9   : > { %4406 = vmatprep.mubr.msk.f32.mxu1 %vm5061_vm5, %v5062_v35 }
0x115c   : > { %v5727_v40 = vpop.f32.mrb[24].mxu0 }
0x115d   : > { %v4372_v41 = vpop.f32.mrb[25].mxu0 }
0x1170   : > { %v4377_v42 = vpop.f32.mrb[26].mxu0 }
0x1171   : > { %v2745_v29 = vmul.f32 0.35355338, %v4377_v42  ;;  %v2735_v43 = vpop.f32.mrb[27].mxu0 }
0x1172   : > { %v2744_v27 = vmul.f32 0.35355338, %v2735_v43  ;;  %v2189_v43 = vld [vmem:[#allocation10 + $0xb8] sm:$0xff] }
0x1173   : > { %v2747_v30 = vsel %vm470_vm2, -1e+09, %v2745_v29  ;;  %v2188_v29 = vld [vmem:[#allocation10 + $0xb0] sm:$0xff] }
0x1174   : > { %v2746_v44 = vsel %vm469_vm4, -1e+09, %v2744_v27  ;;  %v2751_v47 = vsel %vm892_vm3, %v2747_v30, -inf  ;;  %v2187_v27 = vld [vmem:[#allocation10 + $0xa8] sm:$0xff] }
0x1175   : > { %2752 = vmax.xlane.f32.xlu1 %v2751_v47  ;;  %v2748_v48 = vsel %vm892_vm3, %v2746_v44, -inf  ;;  %v3300_v47 = vld [vmem:[#allocation13 + $0x138] sm:$0xff] }
0x1176   : > { %2749 = vmax.xlane.f32.xlu0 %v2748_v48  ;;  %v3299_v48 = vld [vmem:[#allocation13 + $0x130] sm:$0xff] }
0x1177   : > { %v4389_v54 = vpop.f32.mrb[30].mxu1 }
0x1178   : > { %v2965_v58 = vmul.f32 0.35355338, %v4389_v54  ;;  %v2955_v59 = vpop.f32.mrb[31].mxu1  ;;  %v3424_v54 = vld [vmem:[#allocation13 + $0x148] sm:$0xff] }
0x1179   : > { %v2964_v52 = vmul.f32 0.35355338, %v2955_v59  ;;  %v3453_v59 = vld [vmem:[#allocation13 + $0x168] sm:$0xff] }
0x117a   : > { %v2967_v60 = vsel %vm470_vm2, -1e+09, %v2965_v58  ;;  %v3423_v58 = vld [vmem:[#allocation13 + $0x140] sm:$0xff] }
0x117b   : > { %v2966_v62 = vsel %vm469_vm4, -1e+09, %v2964_v52  ;;  %v4401_v63 = vpop.f32.mrb[32].mxu1  ;;  %v2971_v18 = vsel %vm892_vm3, %v2967_v60, -inf  ;;  %v3452_v52 = vld [vmem:[#allocation13 + $0x160] sm:$0xff] }
0x117c   : > { %v3185_v1 = vmul.f32 0.35355338, %v4401_v63  ;;  %2972 = vmax.xlane.f32.xlu1 %v2971_v18  ;;  %v3175_v2 = vpop.f32.mrb[33].mxu1  ;;  %v2968_v51 = vsel %vm892_vm3, %v2966_v62, -inf  ;;  %v3455_v63 = vld [vmem:[#allocation13 + $0x178] sm:$0xff]  ;;  %v3454_v18 = vld [vmem:[#allocation13 + $0x170] sm:$0xff] }
0x117d   : > { %v3184_v5 = vmul.f32 0.35355338, %v3175_v2  ;;  %2969 = vmax.xlane.f32.xlu0 %v2968_v51  ;;  %v3486_v2 = vld [vmem:[#allocation13 + $0x180] sm:$0xff]  ;;  %v3489_v51 = vld [vmem:[#allocation13 + $0x198] sm:$0xff] }
0x117e   : > { %v3187_v6 = vsel %vm470_vm2, -1e+09, %v3185_v1  ;;  %v3487_v1 = vld [vmem:[#allocation13 + $0x188] sm:$0xff] }
0x117f   : > { %v3186_v7 = vsel %vm469_vm4, -1e+09, %v3184_v5  ;;  %v3191_v8 = vsel %vm892_vm3, %v3187_v6, -inf  ;;  %v3488_v5 = vld [vmem:[#allocation13 + $0x190] sm:$0xff] }
0x1180   : > { %3192 = vmax.xlane.f32.xlu1 %v3191_v8  ;;  %v3188_v32 = vsel %vm892_vm3, %v3186_v7, -inf  ;;  %v3620_v8 = vld [vmem:[#allocation13 + $0x1b8] sm:$0xff] }
0x1181   : > { %3189 = vmax.xlane.f32.xlu0 %v3188_v32  ;;  %v3619_v32 = vld [vmem:[#allocation13 + $0x1b0] sm:$0xff] }
0x1202   : > { %v2753_v9 = vpop.xlane.xlu1 %2752 }
0x1203   : > { %v2750_v33 = vpop.xlane.xlu0 %2749  ;;  %v2755_v12 = vsub.f32 %v2747_v30, %v2753_v9  ;;  %v3298_v30 = vld [vmem:[#allocation13 + $0x128] sm:$0xff] }
0x1204   : > { %v2754_v13 = vsub.f32 %v2746_v44, %v2750_v33  ;;  %v3297_v44 = vld [vmem:[#allocation13 + $0x120] sm:$0xff]  ;;  %v3743_v9 = vld [vmem:[#allocation14 + $0x8] sm:$0xff] }
0x1205   : > { %v2758_v20 = vmul.f32 1.442695, %v2755_v12  ;;  %v3742_v33 = vld [vmem:[#allocation14] sm:$0xff]  ;;  %v3774_v12 = vld [vmem:[#allocation14 + $0x38] sm:$0xff] }
0x1206   : > { %v2756_v22 = vmul.f32 1.442695, %v2754_v13 }
0x1209   : > { %v2973_v61 = vpop.xlane.xlu1 %2972 }
0x120a   : > { %v2975_v10 = vsub.f32 %v2967_v60, %v2973_v61  ;;  %v2970_v23 = vpop.xlane.xlu0 %2969  ;;  %v3426_v60 = vld [vmem:[#allocation13 + $0x158] sm:$0xff] }
0x120b   : > { %v2974_v11 = vsub.f32 %v2966_v62, %v2970_v23  ;;  %v3425_v62 = vld [vmem:[#allocation13 + $0x150] sm:$0xff]  ;;  %v3745_v61 = vld [vmem:[#allocation14 + $0x18] sm:$0xff]  ;;  %v3772_v23 = vld [vmem:[#allocation14 + $0x28] sm:$0xff] }
0x120c   : > { %v2978_v14 = vmul.f32 1.442695, %v2975_v10  ;;  %v3744_v10 = vld [vmem:[#allocation14 + $0x10] sm:$0xff] }
0x120d   : > { %v2976_v3 = vmul.f32 1.442695, %v2974_v11  ;;  %v3193_v16 = vpop.xlane.xlu1 %3192  ;;  %v3771_v11 = vld [vmem:[#allocation14 + $0x20] sm:$0xff] }
0x120e   : > { %4709 = vpow2.f32 %v2978_v14  ;;  %v3195_v4 = vsub.f32 %v3187_v6, %v3193_v16  ;;  %v3190_v19 = vpop.xlane.xlu0 %3189  ;;  %v3618_v6 = vld [vmem:[#allocation13 + $0x1a8] sm:$0xff]  ;;  %v3773_v14 = vld [vmem:[#allocation14 + $0x30] sm:$0xff] }
0x120f   : > { %4711 = vpow2.f32 %v2976_v3  ;;  %v3194_v17 = vsub.f32 %v3186_v7, %v3190_v19  ;;  %v3617_v7 = vld [vmem:[#allocation13 + $0x1a0] sm:$0xff] }
0x1210   : > { %v3198_v25 = vmul.f32 1.442695, %v3195_v4 }
0x1211   : > { %v3196_v26 = vmul.f32 1.442695, %v3194_v17 }
0x1212   : > { %4713 = vpow2.f32 %v3198_v25 }
0x1213   : > { %4715 = vpow2.f32 %v3196_v26 }
0x1214   : > { %4717 = vpow2.f32 %v2758_v20 }
0x1215   : > { %4719 = vpow2.f32 %v2756_v22 }
0x1218   : > { %v5747_v31 = vpop.eup %4709 }
0x1219   : > { %v5749_v21 = vpop.eup %4711  ;;  %v2983_v36 = vsel %vm892_vm3, %v5747_v31, 0.0 }
0x121a   : > { %2984 = vadd.xlane.f32.xlu1 %v2983_v36  ;;  %v2980_v24 = vsel %vm892_vm3, %v5749_v21, 0.0 }
0x121b   : > { %2981 = vadd.xlane.f32.xlu0 %v2980_v24 }
0x121c   : > { %v5755_v37 = vpop.eup %4713 }
0x121d   : > { %v5757_v46 = vpop.eup %4715  ;;  %v3203_v15 = vsel %vm892_vm3, %v5755_v37, 0.0 }
0x121e   : > { %v5761_v38 = vpop.eup %4717  ;;  %3204 = vadd.xlane.f32.xlu1 %v3203_v15  ;;  %v3200_v39 = vsel %vm892_vm3, %v5757_v46, 0.0 }
0x121f   : > { %v5765_v28 = vpop.eup %4719  ;;  %3201 = vadd.xlane.f32.xlu0 %v3200_v39  ;;  %v2763_v41 = vsel %vm892_vm3, %v5761_v38, 0.0 }
0x1220   : > { %v2760_v42 = vsel %vm892_vm3, %v5765_v28, 0.0 }
0x1222   : > { %2764 = vadd.xlane.f32.xlu1 %v2763_v41 }
0x1223   : > { %2761 = vadd.xlane.f32.xlu0 %v2760_v42 }
0x1233   : > { %2242 = vperm.xlu1 %4668, %v2188_v29  }
0x1237   : > { %2247 = vperm.xlu1 %4668, %v2189_v43  }
0x1239   : > { %2237 = vperm.xlu0 %4667, %v2187_v27  }
0x123b   : > { %3308 = vperm.xlu1 %4668, %v3298_v30  }
0x123d   : > { %3303 = vperm.xlu0 %4667, %v3297_v44  }
0x123f   : > { %3318 = vperm.xlu1 %4668, %v3300_v47  }
0x1241   : > { %3313 = vperm.xlu0 %4667, %v3299_v48  }
0x1243   : > { %3434 = vperm.xlu1 %4668, %v3424_v54  }
0x1245   : > { %3429 = vperm.xlu0 %4667, %v3423_v58  }
0x1247   : > { %3463 = vperm.xlu1 %4668, %v3453_v59  }
0x1249   : > { %3458 = vperm.xlu0 %4667, %v3452_v52   ;;  %v3295_v52 = vld [vmem:[#allocation11 + $0x78] sm:$0xff] }
0x124b   : > { %3444 = vperm.xlu1 %4668, %v3426_v60   ;;  %v3481_v60 = vld [vmem:[#allocation11 + $0x80] sm:$0xff] }
0x124d   : > { %3439 = vperm.xlu0 %4667, %v3425_v62  }
0x124f   : > { %3473 = vperm.xlu1 %4668, %v3455_v63  }
0x1251   : > { %3468 = vperm.xlu0 %4667, %v3454_v18  }
0x1253   : > { %3497 = vperm.xlu1 %4668, %v3487_v1  }
0x1255   : > { %3492 = vperm.xlu0 %4667, %v3486_v2  }
0x1257   : > { %3507 = vperm.xlu1 %4668, %v3489_v51  }
0x1259   : > { %3502 = vperm.xlu0 %4667, %v3488_v5  }
0x125b   : > { %3628 = vperm.xlu1 %4668, %v3618_v6  }
0x125d   : > { %3623 = vperm.xlu0 %4667, %v3617_v7  }
0x125f   : > { %3638 = vperm.xlu1 %4668, %v3620_v8  }
0x1261   : > { %3633 = vperm.xlu0 %4667, %v3619_v32  }
0x1263   : > { %3753 = vperm.xlu1 %4668, %v3743_v9  }
0x1265   : > { %3748 = vperm.xlu0 %4667, %v3742_v33  }
0x1267   : > { %3763 = vperm.xlu1 %4668, %v3745_v61  }
0x1269   : > { %3758 = vperm.xlu0 %4667, %v3744_v10  }
0x126b   : > { %3782 = vperm.xlu1 %4668, %v3772_v23  }
0x126d   : > { %3777 = vperm.xlu0 %4667, %v3771_v11  }
0x126f   : > { %3792 = vperm.xlu1 %4668, %v3774_v12  }
0x1271   : > { %3787 = vperm.xlu0 %4667, %v3773_v14  }
0x12a7   : > { %v2985_v13 = vpop.xlane.xlu1 %2984 }
0x12a8   : > { %v2982_v3 = vpop.xlane.xlu0 %2981 }
0x12ab   : > { %v3205_v16 = vpop.xlane.xlu1 %3204 }
0x12ac   : > { %4721 = vrcp.f32 %v3205_v16  ;;  %v3202_v4 = vpop.xlane.xlu0 %3201 }
0x12ad   : > { %4723 = vrcp.f32 %v3202_v4 }
0x12af   : > { %v2765_v19 = vpop.xlane.xlu1 %2764 }
0x12b0   : > { %4725 = vrcp.f32 %v2765_v19  ;;  %v2762_v17 = vpop.xlane.xlu0 %2761 }
0x12b1   : > { %4727 = vrcp.f32 %v2762_v17 }
0x12b2   : > { %4729 = vrcp.f32 %v2985_v13 }
0x12b3   : > { %4731 = vrcp.f32 %v2982_v3  ;;  %v2243_v36 = vpop.permute.xlu1 %2242 }
0x12b6   : > { %v4722_v20 = vpop.eup %4721 }
0x12b7   : > { %v4724_v25 = vpop.eup %4723  ;;  %v3211_v22 = vmul.f32 %v4722_v20, %v5755_v37  ;;  %v2248_v43 = vpop.permute.xlu1 %2247 }
0x12b8   : > { %v3210_v26 = vmul.f32 %v4724_v25, %v5757_v46  ;;  %v2408_v37 = vadd.f32 %v5723_v56, %v2248_v43  ;;  %v2238_v44 = vpop.permute.xlu0 %2237  ;;  %v3292_v56 = vld [vmem:[#allocation11 + $0x60] sm:$0xff] }
0x12ba   : > { %v4726_v24 = vpop.eup %4725  ;;  %v4520_v15 = vpack.c.bf16 %v3211_v22, %v3210_v26 }
0x12bb   : > { %v4728_v39 = vpop.eup %4727  ;;  %v2771_v41 = vmul.f32 %v4726_v24, %v5761_v38 }
0x12bc   : > { %v2770_v42 = vmul.f32 %v4728_v39, %v5765_v28  ;;  %4522 = vmatpush3.bf16.xpose.msk.msra.mxu1 %vm5534_vm6, %v4520_v15  ;;  %v4730_v29 = vpop.eup %4729  ;;  %v2398_v28 = vadd.f32 %v5698_v50, %v2238_v44  ;;  %v3304_v62 = vpop.permute.xlu0 %3303  ;;  %v3483_v15 = vld [vmem:[#allocation11 + $0x90] sm:$0xff]  ;;  %v3612_v39 = vld [vmem:[#allocation11 + $0xa0] sm:$0xff] }
0x12bd   : > { %v4732_v30 = vpop.eup %4731  ;;  %v2991_v46 = vmul.f32 %v4730_v29, %v5747_v31 }
0x12be   : > { %v4512_v27 = vpack.c.bf16 %v2771_v41, %v2770_v42  ;;  %v2990_v38 = vmul.f32 %v4732_v30, %v5749_v21 }
0x12c0   : > { %4514 = vmatpush3.bf16.xpose.msk.msra.mxu0 %vm5534_vm6, %v4512_v27  ;;  %v4516_v47 = vpack.c.bf16 %v2991_v46, %v2990_v38  ;;  %v3314_v18 = vpop.permute.xlu0 %3313 }
0x12c1   : > { %4515 = vmatprep.subr.bf16.mxu0 %v5060_v34  ;;  %v2403_v34 = vadd.f32 %v5725_v55, %v2243_v36  ;;  %v3294_v55 = vld [vmem:[#allocation11 + $0x70] sm:$0xff] }
0x12c3   : > { %4407 = vmatmul.mubr.msk.f32.vlgmr.msra.gmra.mrb[34].mxu1 %vm892_vm3, %v2408_v37 }
0x12c4   : > { %4431 = vmatprep.mubr.msk.f32.mxu1 %vm612_vm0, %v3481_v60  ;;  %v3430_v2 = vpop.permute.xlu0 %3429 }
0x12c7   : > { %4383 = vmatmul.mubr.msk.f32.vlgmr.msra.gmra.mrb[28].mxu0 %vm892_vm3, %v2398_v28 }
0x12c8   : > { %4518 = vmatpush3.bf16.xpose.msk.msra.mxu0 %vm5534_vm6, %v4516_v47  ;;  %4394 = vmatprep.mubr.msk.f32.mxu0 %vm5061_vm5, %v5062_v35  ;;  %v3293_v35 = vld [vmem:[#allocation11 + $0x68] sm:$0xff]  ;;  %v3459_v5 = vpop.permute.xlu0 %3458 }
0x12cc   : > { %v3440_v23 = vpop.permute.xlu0 %3439 }
0x12cf   : > { %4395 = vmatmul.mubr.msk.f32.vlgmr.msra.gmra.mrb[30].mxu0 %vm892_vm3, %v2403_v34 }
0x12d0   : > { %4417 = vmatprep.mubr.msk.f32.mxu0 %vm612_vm0, %v3292_v56  ;;  %v3469_v22 = vpop.permute.xlu0 %3468 }
0x12d4   : > { %v3493_v42 = vpop.permute.xlu0 %3492 }
0x12d8   : > { %v3503_v28 = vpop.permute.xlu0 %3502 }
0x1396   : > { %v3287_v31 = vpop.f32.mrb[34].mxu1 }
0x1397   : > { %v4408_v21 = vpop.f32.mrb[35].mxu1 }
0x139a   : > { %v2847_v48 = vpop.f32.mrb[28].mxu0 }
0x139b   : > { %v4523_v50 = vpack.c.bf16 %v2847_v48, %v5727_v40  ;;  %v4384_v54 = vpop.f32.mrb[29].mxu0  ;;  %v3309_v40 = vpop.permute.xlu1 %3308 }
0x139c   : > { %v3613_v54 = vld [vmem:[#allocation11 + $0xa8] sm:$0xff] }
0x139d   : > { %4524 = vmatprep.subr.bf16.mxu0 %v4523_v50 }
0x139e   : > { %4526 = vmatpush3.bf16.msra.mxu0 %v4523_v50 }
0x139f   : > { %v3319_v63 = vpop.permute.xlu1 %3318 }
0x13a2   : > { %v3067_v45 = vpop.f32.mrb[30].mxu0 }
0x13a3   : > { %v4527_v58 = vpack.c.bf16 %v3287_v31, %v3067_v45  ;;  %v4396_v59 = vpop.f32.mrb[31].mxu0  ;;  %v3435_v1 = vpop.permute.xlu1 %3434  ;;  %v3614_v45 = vld [vmem:[#allocation11 + $0xb0] sm:$0xff] }
0x13a5   : > { %4528 = vmatprep.subr.bf16.mxu0 %v4527_v58 }
0x13a6   : > { %4530 = vmatpush3.bf16.msra.mxu0 %v4527_v58  ;;  %v3615_v58 = vld [vmem:[#allocation11 + $0xb8] sm:$0xff] }
0x13a7   : > { %v3464_v51 = vpop.permute.xlu1 %3463 }
0x13a9   : > { %4418 = vmatmul.mubr.msk.f32.vlgmr.msra.gmra.mrb[32].mxu0 %vm612_vm0, %v3293_v35  ;;  %v3624_v35 = vpop.permute.xlu0 %3623 }
0x13aa   : > { %4420 = vmatprep.mubr.msk.f32.mxu0 %vm612_vm0, %v3294_v55 }
0x13ab   : > { %v3445_v33 = vpop.permute.xlu1 %3444 }
0x13ad   : > { %4421 = vmatmul.mubr.msk.f32.gmra.mrb[34].mxu0 %vm612_vm0, %v3295_v52  ;;  %v3634_v52 = vpop.permute.xlu0 %3633 }
0x13ae   : > { %4445 = vmatprep.mubr.msk.f32.mxu0 %vm612_vm0, %v3612_v39 }
0x13af   : > { %v3474_v17 = vpop.permute.xlu1 %3473 }
0x13b3   : > { %v3498_v41 = vpop.permute.xlu1 %3497 }
0x13b7   : > { %v3508_v46 = vpop.permute.xlu1 %3507 }
0x13bb   : > { %v3629_v59 = vpop.permute.xlu1 %3628 }
0x13bf   : > { %v3639_v55 = vpop.permute.xlu1 %3638 }
0x13c3   : > { %v3754_v60 = vpop.permute.xlu1 %3753 }
0x147c   : > { %v4419_v6 = vpop.f32.mrb[32].mxu0 }
0x147d   : > { %v3405_v7 = vadd.f32 %v4419_v6, %v3309_v40  ;;  %v3399_v8 = vpop.f32.mrb[33].mxu0  ;;  %v3749_v40 = vpop.permute.xlu0 %3748 }
0x147e   : > { %v3400_v32 = vadd.f32 %v3399_v8, %v3304_v62  ;;  %v3764_v62 = vpop.permute.xlu1 %3763 }
0x147f   : > { %v5799_v9 = vadd.f32 %v3405_v7, %v5655_v53 }
0x1480   : > { %v5802_v61 = vadd.f32 %v3400_v32, %v5658_v57  ;;  %v4422_v10 = vpop.f32.mrb[34].mxu0 }
0x1481   : > { %v3448_v11 = vmul.f32 %v3435_v1, %v5799_v9  ;;  %v3415_v12 = vadd.f32 %v4422_v10, %v3319_v63  ;;  %v3409_v14 = vpop.f32.mrb[35].mxu0  ;;  %v3759_v63 = vpop.permute.xlu0 %3758 }
0x1482   : > { %v3447_v13 = vmul.f32 %v3430_v2, %v5802_v61  ;;  %v3410_v3 = vadd.f32 %v3409_v14, %v3314_v18  ;;  %v3783_v6 = vpop.permute.xlu1 %3782 }
0x1483   : > { %v5807_v16 = vadd.f32 %v3415_v12, %v5663_v0  ;;  %v3477_v4 = vadd.f32 %v3464_v51, %v3448_v11  ;;  %v3482_v0 = vld [vmem:[#allocation11 + $0x88] sm:$0xff] }
0x1484   : > { %v5810_v53 = vadd.f32 %v3410_v3, %v5666_v49  ;;  %v3476_v19 = vadd.f32 %v3459_v5, %v3447_v13  ;;  %v3484_v49 = vld [vmem:[#allocation11 + $0x98] sm:$0xff] }
0x1485   : > { %v3450_v57 = vmul.f32 %v3445_v33, %v5807_v16  ;;  %v3778_v32 = vpop.permute.xlu0 %3777 }
0x1486   : > { %v3449_v20 = vmul.f32 %v3440_v23, %v5810_v53  ;;  %v4531_v25 = vpack.c.bf16 %v3477_v4, %v3476_v19 }
0x1487   : > { %v3479_v26 = vadd.f32 %v3474_v17, %v3450_v57 }
0x1488   : > { %4532 = vmatprep.subr.bf16.mxu1 %v4531_v25  ;;  %v3478_v36 = vadd.f32 %v3469_v22, %v3449_v20 }
0x1489   : > { %4534 = vmatpush3.bf16.msra.mxu1 %v4531_v25  ;;  %v3788_v57 = vpop.permute.xlu0 %3787 }
0x148a   : > { %v4535_v24 = vpack.c.bf16 %v3479_v26, %v3478_v36 }
0x148c   : > { %4536 = vmatprep.subr.bf16.mxu1 %v4535_v24 }
0x148d   : > { %4538 = vmatpush3.bf16.msra.mxu1 %v4535_v24 }
0x1490   : > { %4432 = vmatmul.mubr.msk.f32.vlgmr.msra.gmra.mrb[36].mxu1 %vm612_vm0, %v3482_v0 }
0x1491   : > { %4434 = vmatprep.mubr.msk.f32.mxu1 %vm612_vm0, %v3483_v15 }
0x1494   : > { %4435 = vmatmul.mubr.msk.f32.gmra.mrb[38].mxu1 %vm612_vm0, %v3484_v49 }
0x1563   : > { %v4433_v29 = vpop.f32.mrb[36].mxu1 }
0x1564   : > { %v3594_v43 = vadd.f32 %v4433_v29, %v3498_v41  ;;  %v3588_v27 = vpop.f32.mrb[37].mxu1 }
0x1565   : > { %v3589_v30 = vadd.f32 %v3588_v27, %v3493_v42 }
0x1566   : > { %v3608_v37 = vmax.f32 %v3594_v43, 0.0 }
0x1567   : > { %v3607_v38 = vmax.f32 %v3589_v30, 0.0  ;;  %v4436_v44 = vpop.f32.mrb[38].mxu1 }
0x1568   : > { %v3604_v47 = vadd.f32 %v4436_v44, %v3508_v46  ;;  %v3598_v34 = vpop.f32.mrb[39].mxu1 }
0x1569   : > { %v4539_v56 = vpack.c.bf16 %v3608_v37, %v3607_v38  ;;  %v3599_v31 = vadd.f32 %v3598_v34, %v3503_v28 }
0x156a   : > { %v3610_v21 = vmax.f32 %v3604_v47, 0.0 }
0x156b   : > { %v3609_v48 = vmax.f32 %v3599_v31, 0.0  ;;  %4540 = vmatprep.subr.bf16.mxu0 %v4539_v56 }
0x156c   : > { %4542 = vmatpush3.bf16.msra.mxu0 %v4539_v56 }
0x156d   : > { %v4543_v50 = vpack.c.bf16 %v3610_v21, %v3609_v48 }
0x156f   : > { %4544 = vmatprep.subr.bf16.mxu0 %v4543_v50 }
0x1570   : > { %4546 = vmatpush3.bf16.msra.mxu0 %v4543_v50 }
0x1573   : > { %4446 = vmatmul.mubr.msk.f32.vlgmr.msra.gmra.mrb[36].mxu0 %vm612_vm0, %v3613_v54 }
0x1574   : > { %4448 = vmatprep.mubr.msk.f32.mxu0 %vm612_vm0, %v3614_v45 }
0x1577   : > { %4449 = vmatmul.mubr.msk.f32.gmra.mrb[38].mxu0 %vm612_vm0, %v3615_v58 }
0x1646   : > { %v4447_v18 = vpop.f32.mrb[36].mxu0 }
0x1647   : > { %v3725_v1 = vadd.f32 %v4447_v18, %v3629_v59  ;;  %v3719_v2 = vpop.f32.mrb[37].mxu0 }
0x1648   : > { %v3720_v51 = vadd.f32 %v3719_v2, %v3624_v35 }
0x1649   : > { %v3739_v5 = vadd.f32 %v3725_v1, %v5799_v9 }
0x164a   : > { %v3738_v7 = vadd.f32 %v3720_v51, %v5802_v61  ;;  %v4450_v8 = vpop.f32.mrb[38].mxu0  ;;  %v3793_v61 = vpop.permute.xlu1 %3792 }
0x164b   : > { %v3767_v33 = vmul.f32 %v3754_v60, %v3739_v5  ;;  %v3735_v10 = vadd.f32 %v4450_v8, %v3639_v55  ;;  %v3729_v23 = vpop.f32.mrb[39].mxu0 }
0x164c   : > { %v3766_v11 = vmul.f32 %v3749_v40, %v3738_v7  ;;  %v3730_v12 = vadd.f32 %v3729_v23, %v3634_v52 }
0x164d   : > { %v3796_v14 = vadd.f32 %v3783_v6, %v3767_v33  ;;  %v3741_v13 = vadd.f32 %v3735_v10, %v5807_v16 }
0x164e   : > { %v3795_v3 = vadd.f32 %v3778_v32, %v3766_v11  ;;  %v3740_v4 = vadd.f32 %v3730_v12, %v5810_v53 }
0x164f   : > { %3800 = vst.msk [vmem:[%s450_s20 + $0x8] sm:$0xff] %vm892_vm3, %v3796_v14  ;;  %v3769_v9 = vmul.f32 %v3764_v62, %v3741_v13 }
0x1650   : > { %3799 = vst.msk [vmem:[%s450_s20] sm:$0xff] %vm892_vm3, %v3795_v3  ;;  %v3768_v19 = vmul.f32 %v3759_v63, %v3740_v4 }
0x1651   : > { %v3798_v17 = vadd.f32 %v3793_v61, %v3769_v9 }
0x1652   : > { %v3797_v16 = vadd.f32 %v3788_v57, %v3768_v19 }
0x1653   : > { %3802 = vst.msk [vmem:[%s450_s20 + $0x18] sm:$0xff] %vm892_vm3, %v3798_v17 }
0x1654   : > { %3801 = vst.msk [vmem:[%s450_s20 + $0x10] sm:$0xff] %vm892_vm3, %v3797_v16 }
0x1655   : > { %4974 = shalt.err (!%p4971_p3)
}
0x1656   : > { %s4975_s9 = scalar_lea.hbm %s5833_s21, 512  ;;  %s4979_s2 = scalar_lea.hbm %s5889_s8, 1024 }
0x1657   : > { %p4976_p12 = scmp.ne.s32.totalorder %s5833_s21, %s4975_s9  ;;  %p4980_p0 = scmp.lt.u32.totalorder %s5833_s21, %s5889_s8 }
0x1658   : > { %p4981_p6 = scmp.lt.u32.totalorder %s4979_s2, %s4975_s9  ;;  %p4983_p4 = scmp.lt.u32.totalorder %s4975_s9, %s5833_s21 }
0x1659   : > { %p4977_p1 = pnand %p4976_p12, %p5932_p10 }
0x165a   : > { %p4982_p2 = por %p4981_p6, %p4980_p0 }
0x165b   : > { %p4978_p13 = pneg %p4977_p1 }
0x165c   : > { %p4984_p5 = por %p4983_p4, %p4982_p2 }
0x165e   : > { %p4985_p7 = pnand %p4984_p5, %p4978_p13 }
0x1660   : > { %4988 = shalt.err (!%p4985_p7)
}
0x1661   : > { %s5064_s12 = smov 128   ;;  %s5065_s14 = smov 8  }
0x1662   : > { %4575 = dma.vmem_to_hbm [thread:$0]  (%p5932_p10), %s5835_s10, 512, %s5833_s21, %s3804_s11, %s5064_s12, %s5064_s12, %s5065_s14  }
0x1663 PF: > { %s3832_s16 = sand.u32 1, %s5035_s27   ;;  %p5933_p9 = scmp.ne.s32.totalorder %s5915_s25, 0 }
0x1664   : > { %p5934_p8 = scmp.ge.s32.totalorder %s5047_s30, 2  ;;  %s3833_s20 = scalar_lea.sflag [#allocation4], %s3832_s16 }
0x1666   : > { %p4604_p11 = pnand %p5934_p8, %p5933_p9 }
0x1668   : > { %5030 = dma.done.wait (!%p4604_p11), %s3833_s20, 512  }
0x1669   : > { %5032 = vsyncadd (!%p4604_p11), %s3833_s20, 4294966784  ;;  %p27_p3 = scmp.ge.s32.totalorder %s5305_s23, 4   ;;  %s5935_s27 = smov %s5039_s28 }
0x166a   : > { %s5936_s28 = smov %s5043_s29  ;;  %s5937_s29 = smov %s5316_s18 }
0x166b   : > { %s5938_s30 = smov %s5305_s23  ;;  %29 = sbr.rel (!%p27_p3) target bundleno = 17 (0x11), region = 155 }
0x1672   :  { %3838 = vsyncpa [#allocation3], 1 }
0x1673   :  { %3840 = vsyncpa [#allocation3 + $0x1], 1 }
0x1674   :  { %3841 = vsyncpa [#allocation6], 1 }
0x1675   :  { %3843 = vsyncpa [#allocation6 + $0x1], 1 }
0x1676   :  { %3844 = vsyncpa [#allocation9], 1 }
0x1677   :  { %3845 = vsyncpa [#allocation12], 1 }
0x1678   :  { %3846 = vsyncpa [#allocation15], 1 }
0x1679   :  { %3847 = vsyncpa [#allocation4], 1 }
0x167a   :  { %3849 = vsyncpa [#allocation4 + $0x1], 1 }

</bundles_post_ra>
